<compile_context>
chip_gen: v7x
topology: tpu7x:2x2x1
jax: 0.10.0
libtpu: 0.0.40
codegen_flags: <defaults>
</compile_context>

<pallas_src>
import functools

import jax
import jax.numpy as jnp
from jax.experimental import pallas as pl
from jax.experimental.pallas import tpu as pltpu


_WEIGHT_ORDER = ("wq", "bq", "wk", "bk", "wv", "bv", "wo", "bo",
                 "ln1_g", "ln1_b", "ln2_g", "ln2_b", "w0", "b0", "w1", "b1")
_MATMUL_WEIGHTS = {"wq", "wk", "wv", "wo", "w0", "w1"}


def _layer_norm(x, gamma, beta, eps=1e-5):
    mean = jnp.mean(x, axis=-1, keepdims=True)
    var = jnp.mean(jnp.square(x - mean), axis=-1, keepdims=True)
    return (x - mean) * jax.lax.rsqrt(var + eps) * gamma + beta


def _gelu(x):
    # tanh-approximate gelu (ERNIE-Vil hidden_act)
    c = 0.7978845608028654  # sqrt(2/pi)
    return 0.5 * x * (1.0 + jnp.tanh(c * (x + 0.044715 * x * x * x)))


def encoder_layer_kernel(n_head, d_key, d_value, tq, kv_chunk,
                         x_ref, bias_ref,
                         wq_ref, bq_ref, wk_ref, bk_ref, wv_ref, bv_ref,
                         wo_ref, bo_ref,
                         ln1_g_ref, ln1_b_ref, ln2_g_ref, ln2_b_ref,
                         w0_ref, b0_ref, w1_ref, b1_ref,
                         out_ref,
                         q_scr, k_scr, v_scr, ctx_scr, ctx_slab):
    f32 = jnp.float32
    bf16 = jnp.bfloat16
    H, dk, dv = n_head, d_key, d_value
    qi = pl.program_id(1)
    scale = dk ** (-0.5)

    ln1_g = ln1_g_ref[0]
    ln1_b = ln1_b_ref[0]

    # ---- K/V projection for the whole sequence: once per batch step, chunked
    #      over N (bounds peak f32 temporaries), stored head-major. ----
    @pl.when(qi == 0)
    def _():
        n_chunks = k_scr.shape[1] // kv_chunk

        def kv_body(c, carry):
            r0 = pl.multiple_of(c * kv_chunk, kv_chunk)
            rows = pl.ds(r0, kv_chunk)
            x_c = x_ref[0, rows, :].astype(f32)
            pre = _layer_norm(x_c, ln1_g, ln1_b).astype(bf16)
            k_c = (jnp.dot(pre, wk_ref[...], preferred_element_type=f32)
                   + bk_ref[0]).astype(bf16)                       # [chunk, H*dk]
            v_c = (jnp.dot(pre, wv_ref[...], preferred_element_type=f32)
                   + bv_ref[0]).astype(bf16)                       # [chunk, H*dv]
            for h in range(H):   # static lane slices, paid once per batch step
                k_scr[h, rows, :] = k_c[:, h * dk:(h + 1) * dk]
                v_scr[h, rows, :] = v_c[:, h * dv:(h + 1) * dv]
            return carry

        jax.lax.fori_loop(0, n_chunks, kv_body, 0)

    # ---- pre_att LayerNorm + Q projection for this row tile ----
    r_tile = pl.multiple_of(qi * tq, tq)
    x_t = x_ref[0, pl.ds(r_tile, tq), :].astype(f32)               # [tq, D]
    pre_t = _layer_norm(x_t, ln1_g, ln1_b).astype(bf16)
    q_t = ((jnp.dot(pre_t, wq_ref[...], preferred_element_type=f32)
            + bq_ref[0]) * scale).astype(bf16)                     # [tq, H*dk]
    for h in range(H):                                             # stage head-major
        q_scr[h] = q_t[:, h * dk:(h + 1) * dk]

    # ---- per-head attention; fori_loop bounds live ranges across heads ----
    def head_body(h, carry):
        logits = jax.lax.dot_general(
            q_scr[h], k_scr[h], (((1,), (1,)), ((), ())),
            preferred_element_type=f32)                            # [tq, N]
        logits = logits + bias_ref[0, h].astype(f32)
        m = jnp.max(logits, axis=-1, keepdims=True)
        e = jnp.exp(logits - m)
        p = e * pl.reciprocal(jnp.sum(e, axis=-1, keepdims=True), approx=True)
        ctx_scr[h] = jnp.dot(p.astype(bf16), v_scr[h],
                             preferred_element_type=f32).astype(bf16)
        return carry

    jax.lax.fori_loop(0, H, head_body, 0)

    # ---- combine heads into a [tq, H*dv] slab; single wide output projection ----
    for h in range(H):
        ctx_slab[:, h * dv:(h + 1) * dv] = ctx_scr[h]
    proj = jnp.dot(ctx_slab[...], wo_ref[...],
                   preferred_element_type=f32) + bo_ref[0]         # [tq, D]

    # ---- post_att: residual ----
    attn_out = proj + x_t

    # ---- pre_ffn LayerNorm + FFN ----
    pre2 = _layer_norm(attn_out, ln2_g_ref[0], ln2_b_ref[0]).astype(bf16)
    hidden = jnp.dot(pre2, w0_ref[...], preferred_element_type=f32) + b0_ref[0]
    hidden = _gelu(hidden).astype(bf16)
    ffd = jnp.dot(hidden, w1_ref[...], preferred_element_type=f32) + b1_ref[0]

    # ---- post_ffn: residual ----
    out_ref[0] = (ffd + attn_out).astype(out_ref.dtype)


def prepare_params(params):
    """Cast matmul weights to bf16 once, outside the per-layer call path."""
    return {name: params[name].astype(
                jnp.bfloat16 if name in _MATMUL_WEIGHTS else jnp.float32)
            for name in _WEIGHT_ORDER}


def _vmem_capacity_bytes():
    try:
        return int(getattr(pltpu.get_tpu_info(), "vmem_capacity_bytes",
                           128 * 1024 * 1024))
    except Exception:
        return 128 * 1024 * 1024


def _choose_tile(n, h, d, dk, dv, weight_bytes, vmem_cap):
    """Largest row tile (divisor of n) whose resident set fits the VMEM budget."""
    budget = int(vmem_cap * 0.85) - 2 * weight_bytes - 2 * n * h * (dk + dv)
    cands = [t for t in (512, 256, 128, 64, 32, 16, 8) if t <= n and n % t == 0]
    if not cands:
        return n   # odd sequence length: single full-sequence tile
    for t in cands:
        per_tile = (2 * h * t * n * 2        # bf16 bias tile, double-buffered
                    + 2 * t * d * 4          # output tile, double-buffered
                    + 2 * n * d * 4          # full-x block
                    + 6 * t * h * (dk + dv)  # q / ctx scratch + headroom
                    )
        if per_tile <= budget:
            return t
    return cands[-1]


def _choose_kv_chunk(n):
    for t in (512, 256, 128, 64, 32, 16, 8):
        if t <= n and n % t == 0:
            return t
    return n


def encoder_layer_forward(x, attn_bias, params, *, n_head, d_key, d_value):
    B, N, D = x.shape
    H = n_head
    assert attn_bias.shape == (B, H, N, N)
    d_inner = params["w0"].shape[-1]

    # bf16 matmul weights (no-op if prepare_params already applied), f32 LN/biases.
    weights = [params[name].astype(
                   jnp.bfloat16 if name in _MATMUL_WEIGHTS else jnp.float32)
               for name in _WEIGHT_ORDER]
    weight_bytes = sum(int(w.size) * w.dtype.itemsize for w in weights)

    # bf16 attention bias halves the dominant streamed operand; added in f32 in-kernel.
    bias = attn_bias.astype(jnp.bfloat16)

    vmem_cap = _vmem_capacity_bytes()
    tq = _choose_tile(N, H, D, d_key, d_value, weight_bytes, vmem_cap)
    kv_chunk = _choose_kv_chunk(N)
    n_qt = N // tq

    scratch_shapes = [
        pltpu.VMEM((H, tq, d_key), jnp.bfloat16),      # q, head-major
        pltpu.VMEM((H, N, d_key), jnp.bfloat16),       # k, head-major
        pltpu.VMEM((H, N, d_value), jnp.bfloat16),     # v, head-major
        pltpu.VMEM((H, tq, d_value), jnp.bfloat16),    # per-head context
        pltpu.VMEM((tq, H * d_value), jnp.bfloat16),   # combined-heads slab
    ]
    scratch_bytes = 2 * (H * tq * d_key + H * N * d_key + H * N * d_value
                         + H * tq * d_value + tq * H * d_value)
    resident = (2 * weight_bytes
                + 2 * N * D * x.dtype.itemsize
                + 2 * H * tq * N * 2
                + 2 * tq * D * 4
                + scratch_bytes)
    vmem_limit = int(min(vmem_cap - 8 * 1024 * 1024,
                         max(32 * 1024 * 1024, resident + 16 * 1024 * 1024)))

    flops_per_batch = (
        2 * N * D * (H * d_key) * 2        # q, k projections
        + 2 * N * D * (H * d_value)        # v projection
        + 2 * H * N * N * d_key            # logits
        + 2 * H * N * N * d_value          # weights @ v
        + 2 * N * (H * d_value) * D        # output projection
        + 2 * N * D * d_inner * 2          # ffn fc0 + fc1
    )
    cost = pl.CostEstimate(
        flops=int(B * flops_per_batch),
        transcendentals=int(B * (H * N * N + N * d_inner)),
        bytes_accessed=int(2 * x.size * x.dtype.itemsize
                           + bias.size * bias.dtype.itemsize + weight_bytes))

    kernel = functools.partial(encoder_layer_kernel,
                               H, d_key, d_value, tq, kv_chunk)

    def call(single_buffer):
        inv_kwargs = ({"pipeline_mode": pl.Buffered(1)} if single_buffer else {})
        in_specs = [
            # full sequence of x (K/V projection + in-kernel row-tile slicing)
            pl.BlockSpec((1, N, D), lambda b, qi: (b, 0, 0), **inv_kwargs),
            # attn_bias row tile (bf16)
            pl.BlockSpec((1, H, tq, N), lambda b, qi: (b, 0, qi, 0)),
        ]
        for w in weights:  # grid-invariant weights / biases / LN params
            nd = w.ndim
            in_specs.append(pl.BlockSpec(
                w.shape, lambda b, qi, _nd=nd: (0,) * _nd, **inv_kwargs))
        out_spec = pl.BlockSpec((1, tq, D), lambda b, qi: (b, qi, 0))

        return pl.pallas_call(
            kernel,
            out_shape=jax.ShapeDtypeStruct((B, N, D), x.dtype),
            grid_spec=pltpu.PrefetchScalarGridSpec(
                num_scalar_prefetch=0,
                grid=(B, n_qt),
                in_specs=in_specs,
                out_specs=out_spec,
                scratch_shapes=scratch_shapes),
            compiler_params=pltpu.CompilerParams(
                dimension_semantics=("parallel", "arbitrary"),
                vmem_limit_bytes=vmem_limit),
            cost_estimate=cost,
        )(x, bias, *weights)

    if hasattr(pl, "Buffered"):
        try:
            return call(True)
        except Exception:
            pass  # pipeline_mode not supported by this jax version: fall back
    return call(False)


def reference_forward(x, attn_bias, p, *, n_head, d_key, d_value):
    """Pure-JAX f32 reference mirroring the PyTorch forward pass."""
    B, N, D = x.shape

    def ln(y, g, b):
        mean = jnp.mean(y, axis=-1, keepdims=True)
        var = jnp.mean(jnp.square(y - mean), axis=-1, keepdims=True)
        return (y - mean) * jax.lax.rsqrt(var + 1e-5) * g + b

    pre = ln(x, p["ln1_g"][0], p["ln1_b"][0])
    q = pre @ p["wq"] + p["bq"][0]
    k = pre @ p["wk"] + p["bk"][0]
    v = pre @ p["wv"] + p["bv"][0]
    q = q.reshape(B, N, n_head, d_key).transpose(0, 2, 1, 3)
    k = k.reshape(B, N, n_head, d_key).transpose(0, 2, 1, 3)
    v = v.reshape(B, N, n_head, d_value).transpose(0, 2, 1, 3)
    logits = (q * d_key ** (-0.5)) @ k.transpose(0, 1, 3, 2) + attn_bias
    w = jax.nn.softmax(logits, axis=-1)
    ctx = (w @ v).transpose(0, 2, 1, 3).reshape(B, N, n_head * d_value)
    proj = ctx @ p["wo"] + p["bo"][0]
    attn_out = proj + x
    pre2 = ln(attn_out, p["ln2_g"][0], p["ln2_b"][0])
    hidden = _gelu(pre2 @ p["w0"] + p["b0"][0])
    return hidden @ p["w1"] + p["b1"][0] + attn_out


def init_params(key, d_model, d_key, d_value, n_head, d_inner):
    ks = jax.random.split(key, 12)
    s = 0.02
    return {
        "wq": s * jax.random.normal(ks[0], (d_model, d_key * n_head), jnp.float32),
        "bq": s * jax.random.normal(ks[1], (1, d_key * n_head), jnp.float32),
        "wk": s * jax.random.normal(ks[2], (d_model, d_key * n_head), jnp.float32),
        "bk": s * jax.random.normal(ks[3], (1, d_key * n_head), jnp.float32),
        "wv": s * jax.random.normal(ks[4], (d_model, d_value * n_head), jnp.float32),
        "bv": s * jax.random.normal(ks[5], (1, d_value * n_head), jnp.float32),
        "wo": s * jax.random.normal(ks[6], (d_value * n_head, d_model), jnp.float32),
        "bo": s * jax.random.normal(ks[7], (1, d_model), jnp.float32),
        "ln1_g": jnp.ones((1, d_model), jnp.float32),
        "ln1_b": jnp.zeros((1, d_model), jnp.float32),
        "ln2_g": jnp.ones((1, d_model), jnp.float32),
        "ln2_b": jnp.zeros((1, d_model), jnp.float32),
        "w0": s * jax.random.normal(ks[8], (d_model, d_inner), jnp.float32),
        "b0": s * jax.random.normal(ks[9], (1, d_inner), jnp.float32),
        "w1": s * jax.random.normal(ks[10], (d_inner, d_model), jnp.float32),
        "b1": s * jax.random.normal(ks[11], (1, d_model), jnp.float32),
    }


if __name__ == "__main__":
    # Small config: B=2, seq N=8, d_model=32, n_head=2, d_key=d_value=16, d_inner=64
    B, N = 2, 8
    n_head, d_key, d_value = 2, 16, 16
    d_model = n_head * d_value   # output_fc input dim must equal combine_heads width
    d_inner = 64

    key = jax.random.PRNGKey(0)
    k_x, k_b, k_p = jax.random.split(key, 3)
    x = jax.random.normal(k_x, (B, N, d_model), jnp.float32)
    attn_bias = 0.1 * jax.random.normal(k_b, (B, n_head, N, N), jnp.float32)
    params = init_params(k_p, d_model, d_key, d_value, n_head, d_inner)
    kernel_params = prepare_params(params)   # bf16 matmul weights, cast once

    out = encoder_layer_forward(x, attn_bias, kernel_params,
                                n_head=n_head, d_key=d_key, d_value=d_value)
    out = jax.block_until_ready(out)

    ref = reference_forward(x, attn_bias, params,
                            n_head=n_head, d_key=d_key, d_value=d_value)
    ref = jax.block_until_ready(ref)

    assert out.shape == (B, N, d_model)
    assert jnp.allclose(out, ref, atol=2e-2, rtol=2e-2), "mismatch vs reference"
    print("KERNEL_OK")
</pallas_src>

<mosaic_0001>
module attributes {stable_mosaic.version = 11 : i64} {
  func.func @encoder_layer_kernel(%arg0: i32, %arg1: i32, %arg2: memref<1x8x32xf32, #tpu.memory_space<vmem>>, %arg3: memref<1x2x8x8xbf16, #tpu.memory_space<vmem>>, %arg4: memref<32x32xbf16, #tpu.memory_space<vmem>>, %arg5: memref<1x32xf32, #tpu.memory_space<vmem>>, %arg6: memref<32x32xbf16, #tpu.memory_space<vmem>>, %arg7: memref<1x32xf32, #tpu.memory_space<vmem>>, %arg8: memref<32x32xbf16, #tpu.memory_space<vmem>>, %arg9: memref<1x32xf32, #tpu.memory_space<vmem>>, %arg10: memref<32x32xbf16, #tpu.memory_space<vmem>>, %arg11: memref<1x32xf32, #tpu.memory_space<vmem>>, %arg12: memref<1x32xf32, #tpu.memory_space<vmem>>, %arg13: memref<1x32xf32, #tpu.memory_space<vmem>>, %arg14: memref<1x32xf32, #tpu.memory_space<vmem>>, %arg15: memref<1x32xf32, #tpu.memory_space<vmem>>, %arg16: memref<32x64xbf16, #tpu.memory_space<vmem>>, %arg17: memref<1x64xf32, #tpu.memory_space<vmem>>, %arg18: memref<64x32xbf16, #tpu.memory_space<vmem>>, %arg19: memref<1x32xf32, #tpu.memory_space<vmem>>, %arg20: memref<1x8x32xf32, #tpu.memory_space<vmem>>, %arg21: memref<2x8x16xbf16, #tpu.memory_space<vmem>>, %arg22: memref<2x8x16xbf16, #tpu.memory_space<vmem>>, %arg23: memref<2x8x16xbf16, #tpu.memory_space<vmem>>, %arg24: memref<2x8x16xbf16, #tpu.memory_space<vmem>>, %arg25: memref<8x32xbf16, #tpu.memory_space<vmem>>) attributes {dimension_semantics = [#tpu.dimension_semantics<parallel>, #tpu.dimension_semantics<arbitrary>], iteration_bounds = array<i64: 2, 1>, scalar_prefetch = 0 : i64, scratch_operands = 5 : i64, tpu.core_type = #tpu.core_type<tc>, window_params = [{pipeline_mode = #tpu.pipeline_mode<synchronous>, transform_indices = @transform_0, window_bounds = array<i64: 1, 8, 32>}, {transform_indices = @transform_1, window_bounds = array<i64: 1, 2, 8, 8>}, {pipeline_mode = #tpu.pipeline_mode<synchronous>, transform_indices = @transform_2, window_bounds = array<i64: 32, 32>}, {pipeline_mode = #tpu.pipeline_mode<synchronous>, transform_indices = @transform_3, window_bounds = array<i64: 1, 32>}, {pipeline_mode = #tpu.pipeline_mode<synchronous>, transform_indices = @transform_4, window_bounds = array<i64: 32, 32>}, {pipeline_mode = #tpu.pipeline_mode<synchronous>, transform_indices = @transform_5, window_bounds = array<i64: 1, 32>}, {pipeline_mode = #tpu.pipeline_mode<synchronous>, transform_indices = @transform_6, window_bounds = array<i64: 32, 32>}, {pipeline_mode = #tpu.pipeline_mode<synchronous>, transform_indices = @transform_7, window_bounds = array<i64: 1, 32>}, {pipeline_mode = #tpu.pipeline_mode<synchronous>, transform_indices = @transform_8, window_bounds = array<i64: 32, 32>}, {pipeline_mode = #tpu.pipeline_mode<synchronous>, transform_indices = @transform_9, window_bounds = array<i64: 1, 32>}, {pipeline_mode = #tpu.pipeline_mode<synchronous>, transform_indices = @transform_10, window_bounds = array<i64: 1, 32>}, {pipeline_mode = #tpu.pipeline_mode<synchronous>, transform_indices = @transform_11, window_bounds = array<i64: 1, 32>}, {pipeline_mode = #tpu.pipeline_mode<synchronous>, transform_indices = @transform_12, window_bounds = array<i64: 1, 32>}, {pipeline_mode = #tpu.pipeline_mode<synchronous>, transform_indices = @transform_13, window_bounds = array<i64: 1, 32>}, {pipeline_mode = #tpu.pipeline_mode<synchronous>, transform_indices = @transform_14, window_bounds = array<i64: 32, 64>}, {pipeline_mode = #tpu.pipeline_mode<synchronous>, transform_indices = @transform_15, window_bounds = array<i64: 1, 64>}, {pipeline_mode = #tpu.pipeline_mode<synchronous>, transform_indices = @transform_16, window_bounds = array<i64: 64, 32>}, {pipeline_mode = #tpu.pipeline_mode<synchronous>, transform_indices = @transform_17, window_bounds = array<i64: 1, 32>}, {transform_indices = @transform_18, window_bounds = array<i64: 1, 8, 32>}]} {
    %c0 = arith.constant 0 : index
    %c0_0 = arith.constant 0 : index
    %0 = vector.load %arg12[%c0, %c0_0] : memref<1x32xf32, #tpu.memory_space<vmem>>, vector<1x32xf32>
    %1 = vector.shape_cast %0 : vector<1x32xf32> to vector<32xf32>
    %c0_1 = arith.constant 0 : index
    %c0_2 = arith.constant 0 : index
    %2 = vector.load %arg13[%c0_1, %c0_2] : memref<1x32xf32, #tpu.memory_space<vmem>>, vector<1x32xf32>
    %3 = vector.shape_cast %2 : vector<1x32xf32> to vector<32xf32>
    %c0_i32 = arith.constant 0 : i32
    %4 = arith.cmpi eq, %arg1, %c0_i32 : i32
    %5 = arith.extui %4 : i1 to i32
    %c0_i32_3 = arith.constant 0 : i32
    %6 = arith.cmpi ne, %5, %c0_i32_3 : i32
    scf.if %6 {
      %c0_i32_65 = arith.constant 0 : i32
      %c8_i32_66 = arith.constant 8 : i32
      %132 = arith.muli %c0_i32_65, %c8_i32_66 : i32
      %133 = tpu.assume_multiple %132, 8 : i32
      %c0_67 = arith.constant 0 : index
      %134 = arith.index_cast %133 : i32 to index
      %c0_68 = arith.constant 0 : index
      %135 = vector.load %arg2[%c0_67, %134, %c0_68] : memref<1x8x32xf32, #tpu.memory_space<vmem>>, vector<1x8x32xf32>
      %136 = vector.shape_cast %135 : vector<1x8x32xf32> to vector<8x32xf32>
      %cst_69 = arith.constant dense<0.000000e+00> : vector<8xf32>
      %137 = vector.multi_reduction <add>, %136, %cst_69 [1] : vector<8x32xf32> to vector<8xf32>
      %138 = vector.shape_cast %137 : vector<8xf32> to vector<8x1xf32>
      %cst_70 = arith.constant 3.200000e+01 : f32
      %139 = vector.broadcast %cst_70 : f32 to vector<8x1xf32>
      %140 = arith.divf %138, %139 : vector<8x1xf32>
      %141 = vector.broadcast %140 : vector<8x1xf32> to vector<8x32xf32>
      %142 = arith.subf %136, %141 : vector<8x32xf32>
      %143 = arith.mulf %142, %142 : vector<8x32xf32>
      %cst_71 = arith.constant dense<0.000000e+00> : vector<8xf32>
      %144 = vector.multi_reduction <add>, %143, %cst_71 [1] : vector<8x32xf32> to vector<8xf32>
      %145 = vector.shape_cast %144 : vector<8xf32> to vector<8x1xf32>
      %cst_72 = arith.constant 3.200000e+01 : f32
      %146 = vector.broadcast %cst_72 : f32 to vector<8x1xf32>
      %147 = arith.divf %145, %146 : vector<8x1xf32>
      %148 = vector.broadcast %140 : vector<8x1xf32> to vector<8x32xf32>
      %149 = arith.subf %136, %148 : vector<8x32xf32>
      %cst_73 = arith.constant 9.99999974E-6 : f32
      %150 = vector.broadcast %cst_73 : f32 to vector<8x1xf32>
      %151 = arith.addf %147, %150 : vector<8x1xf32>
      %152 = math.rsqrt %151 : vector<8x1xf32>
      %153 = vector.broadcast %152 : vector<8x1xf32> to vector<8x32xf32>
      %154 = arith.mulf %149, %153 : vector<8x32xf32>
      %155 = vector.shape_cast %1 : vector<32xf32> to vector<1x32xf32>
      %156 = vector.broadcast %155 : vector<1x32xf32> to vector<8x32xf32>
      %157 = arith.mulf %154, %156 : vector<8x32xf32>
      %158 = vector.shape_cast %3 : vector<32xf32> to vector<1x32xf32>
      %159 = vector.broadcast %158 : vector<1x32xf32> to vector<8x32xf32>
      %160 = arith.addf %157, %159 : vector<8x32xf32>
      %161 = arith.truncf %160 : vector<8x32xf32> to vector<8x32xbf16>
      %c0_74 = arith.constant 0 : index
      %c0_75 = arith.constant 0 : index
      %162 = vector.load %arg6[%c0_74, %c0_75] : memref<32x32xbf16, #tpu.memory_space<vmem>>, vector<32x32xbf16>
      %cst_76 = arith.constant dense<0.000000e+00> : vector<8x32xf32>
      %163 = tpu.matmul %161, %162, %cst_76 {dimension_numbers = #tpu.dot_dimension_numbers<[1], [0], [0], [1], [0, 0, 1, 1], [], []>} : vector<8x32xbf16>, vector<32x32xbf16>, vector<8x32xf32> -> vector<8x32xf32>
      %c0_77 = arith.constant 0 : index
      %c0_78 = arith.constant 0 : index
      %164 = vector.load %arg7[%c0_77, %c0_78] : memref<1x32xf32, #tpu.memory_space<vmem>>, vector<1x32xf32>
      %165 = vector.shape_cast %164 : vector<1x32xf32> to vector<32xf32>
      %166 = vector.shape_cast %165 : vector<32xf32> to vector<1x32xf32>
      %167 = vector.broadcast %166 : vector<1x32xf32> to vector<8x32xf32>
      %168 = arith.addf %163, %167 : vector<8x32xf32>
      %169 = arith.truncf %168 : vector<8x32xf32> to vector<8x32xbf16>
      %c0_79 = arith.constant 0 : index
      %c0_80 = arith.constant 0 : index
      %170 = vector.load %arg8[%c0_79, %c0_80] : memref<32x32xbf16, #tpu.memory_space<vmem>>, vector<32x32xbf16>
      %cst_81 = arith.constant dense<0.000000e+00> : vector<8x32xf32>
      %171 = tpu.matmul %161, %170, %cst_81 {dimension_numbers = #tpu.dot_dimension_numbers<[1], [0], [0], [1], [0, 0, 1, 1], [], []>} : vector<8x32xbf16>, vector<32x32xbf16>, vector<8x32xf32> -> vector<8x32xf32>
      %c0_82 = arith.constant 0 : index
      %c0_83 = arith.constant 0 : index
      %172 = vector.load %arg9[%c0_82, %c0_83] : memref<1x32xf32, #tpu.memory_space<vmem>>, vector<1x32xf32>
      %173 = vector.shape_cast %172 : vector<1x32xf32> to vector<32xf32>
      %174 = vector.shape_cast %173 : vector<32xf32> to vector<1x32xf32>
      %175 = vector.broadcast %174 : vector<1x32xf32> to vector<8x32xf32>
      %176 = arith.addf %171, %175 : vector<8x32xf32>
      %177 = arith.truncf %176 : vector<8x32xf32> to vector<8x32xbf16>
      %178 = vector.extract_strided_slice %169 {offsets = [0, 0], sizes = [8, 16], strides = [1, 1]} : vector<8x32xbf16> to vector<8x16xbf16>
      %c0_84 = arith.constant 0 : index
      %179 = arith.index_cast %133 : i32 to index
      %c0_85 = arith.constant 0 : index
      %180 = vector.load %arg22[%c0_84, %179, %c0_85] : memref<2x8x16xbf16, #tpu.memory_space<vmem>>, vector<1x8x16xbf16>
      %181 = vector.shape_cast %180 : vector<1x8x16xbf16> to vector<8x16xbf16>
      %182 = vector.shape_cast %178 : vector<8x16xbf16> to vector<1x8x16xbf16>
      tpu.vector_store %arg22[%c0_84, %179, %c0_85], %182 {strides = array<i32>} : memref<2x8x16xbf16, #tpu.memory_space<vmem>>, vector<1x8x16xbf16>,
      %183 = vector.extract_strided_slice %177 {offsets = [0, 0], sizes = [8, 16], strides = [1, 1]} : vector<8x32xbf16> to vector<8x16xbf16>
      %c0_86 = arith.constant 0 : index
      %184 = arith.index_cast %133 : i32 to index
      %c0_87 = arith.constant 0 : index
      %185 = vector.load %arg23[%c0_86, %184, %c0_87] : memref<2x8x16xbf16, #tpu.memory_space<vmem>>, vector<1x8x16xbf16>
      %186 = vector.shape_cast %185 : vector<1x8x16xbf16> to vector<8x16xbf16>
      %187 = vector.shape_cast %183 : vector<8x16xbf16> to vector<1x8x16xbf16>
      tpu.vector_store %arg23[%c0_86, %184, %c0_87], %187 {strides = array<i32>} : memref<2x8x16xbf16, #tpu.memory_space<vmem>>, vector<1x8x16xbf16>,
      %188 = vector.extract_strided_slice %169 {offsets = [0, 16], sizes = [8, 16], strides = [1, 1]} : vector<8x32xbf16> to vector<8x16xbf16>
      %c1_88 = arith.constant 1 : index
      %189 = arith.index_cast %133 : i32 to index
      %c0_89 = arith.constant 0 : index
      %190 = vector.load %arg22[%c1_88, %189, %c0_89] : memref<2x8x16xbf16, #tpu.memory_space<vmem>>, vector<1x8x16xbf16>
      %191 = vector.shape_cast %190 : vector<1x8x16xbf16> to vector<8x16xbf16>
      %192 = vector.shape_cast %188 : vector<8x16xbf16> to vector<1x8x16xbf16>
      tpu.vector_store %arg22[%c1_88, %189, %c0_89], %192 {strides = array<i32>} : memref<2x8x16xbf16, #tpu.memory_space<vmem>>, vector<1x8x16xbf16>,
      %193 = vector.extract_strided_slice %177 {offsets = [0, 16], sizes = [8, 16], strides = [1, 1]} : vector<8x32xbf16> to vector<8x16xbf16>
      %c1_90 = arith.constant 1 : index
      %194 = arith.index_cast %133 : i32 to index
      %c0_91 = arith.constant 0 : index
      %195 = vector.load %arg23[%c1_90, %194, %c0_91] : memref<2x8x16xbf16, #tpu.memory_space<vmem>>, vector<1x8x16xbf16>
      %196 = vector.shape_cast %195 : vector<1x8x16xbf16> to vector<8x16xbf16>
      %197 = vector.shape_cast %193 : vector<8x16xbf16> to vector<1x8x16xbf16>
      tpu.vector_store %arg23[%c1_90, %194, %c0_91], %197 {strides = array<i32>} : memref<2x8x16xbf16, #tpu.memory_space<vmem>>, vector<1x8x16xbf16>,
      %c1_i32_92 = arith.constant 1 : i32
    } else {
    }
    %c8_i32 = arith.constant 8 : i32
    %7 = arith.muli %arg1, %c8_i32 : i32
    %8 = tpu.assume_multiple %7, 8 : i32
    %c0_4 = arith.constant 0 : index
    %9 = arith.index_cast %8 : i32 to index
    %c0_5 = arith.constant 0 : index
    %10 = vector.load %arg2[%c0_4, %9, %c0_5] : memref<1x8x32xf32, #tpu.memory_space<vmem>>, vector<1x8x32xf32>
    %11 = vector.shape_cast %10 : vector<1x8x32xf32> to vector<8x32xf32>
    %cst = arith.constant dense<0.000000e+00> : vector<8xf32>
    %12 = vector.multi_reduction <add>, %11, %cst [1] : vector<8x32xf32> to vector<8xf32>
    %13 = vector.shape_cast %12 : vector<8xf32> to vector<8x1xf32>
    %cst_6 = arith.constant 3.200000e+01 : f32
    %14 = vector.broadcast %cst_6 : f32 to vector<8x1xf32>
    %15 = arith.divf %13, %14 : vector<8x1xf32>
    %16 = vector.broadcast %15 : vector<8x1xf32> to vector<8x32xf32>
    %17 = arith.subf %11, %16 : vector<8x32xf32>
    %18 = arith.mulf %17, %17 : vector<8x32xf32>
    %cst_7 = arith.constant dense<0.000000e+00> : vector<8xf32>
    %19 = vector.multi_reduction <add>, %18, %cst_7 [1] : vector<8x32xf32> to vector<8xf32>
    %20 = vector.shape_cast %19 : vector<8xf32> to vector<8x1xf32>
    %cst_8 = arith.constant 3.200000e+01 : f32
    %21 = vector.broadcast %cst_8 : f32 to vector<8x1xf32>
    %22 = arith.divf %20, %21 : vector<8x1xf32>
    %23 = vector.broadcast %15 : vector<8x1xf32> to vector<8x32xf32>
    %24 = arith.subf %11, %23 : vector<8x32xf32>
    %cst_9 = arith.constant 9.99999974E-6 : f32
    %25 = vector.broadcast %cst_9 : f32 to vector<8x1xf32>
    %26 = arith.addf %22, %25 : vector<8x1xf32>
    %27 = math.rsqrt %26 : vector<8x1xf32>
    %28 = vector.broadcast %27 : vector<8x1xf32> to vector<8x32xf32>
    %29 = arith.mulf %24, %28 : vector<8x32xf32>
    %30 = vector.shape_cast %1 : vector<32xf32> to vector<1x32xf32>
    %31 = vector.broadcast %30 : vector<1x32xf32> to vector<8x32xf32>
    %32 = arith.mulf %29, %31 : vector<8x32xf32>
    %33 = vector.shape_cast %3 : vector<32xf32> to vector<1x32xf32>
    %34 = vector.broadcast %33 : vector<1x32xf32> to vector<8x32xf32>
    %35 = arith.addf %32, %34 : vector<8x32xf32>
    %36 = arith.truncf %35 : vector<8x32xf32> to vector<8x32xbf16>
    %c0_10 = arith.constant 0 : index
    %c0_11 = arith.constant 0 : index
    %37 = vector.load %arg4[%c0_10, %c0_11] : memref<32x32xbf16, #tpu.memory_space<vmem>>, vector<32x32xbf16>
    %cst_12 = arith.constant dense<0.000000e+00> : vector<8x32xf32>
    %38 = tpu.matmul %36, %37, %cst_12 {dimension_numbers = #tpu.dot_dimension_numbers<[1], [0], [0], [1], [0, 0, 1, 1], [], []>} : vector<8x32xbf16>, vector<32x32xbf16>, vector<8x32xf32> -> vector<8x32xf32>
    %c0_13 = arith.constant 0 : index
    %c0_14 = arith.constant 0 : index
    %39 = vector.load %arg5[%c0_13, %c0_14] : memref<1x32xf32, #tpu.memory_space<vmem>>, vector<1x32xf32>
    %40 = vector.shape_cast %39 : vector<1x32xf32> to vector<32xf32>
    %41 = vector.shape_cast %40 : vector<32xf32> to vector<1x32xf32>
    %42 = vector.broadcast %41 : vector<1x32xf32> to vector<8x32xf32>
    %43 = arith.addf %38, %42 : vector<8x32xf32>
    %cst_15 = arith.constant 2.500000e-01 : f32
    %44 = vector.broadcast %cst_15 : f32 to vector<8x32xf32>
    %45 = arith.mulf %43, %44 : vector<8x32xf32>
    %46 = arith.truncf %45 : vector<8x32xf32> to vector<8x32xbf16>
    %47 = vector.extract_strided_slice %46 {offsets = [0, 0], sizes = [8, 16], strides = [1, 1]} : vector<8x32xbf16> to vector<8x16xbf16>
    %c0_16 = arith.constant 0 : index
    %c0_17 = arith.constant 0 : index
    %c0_18 = arith.constant 0 : index
    %48 = vector.load %arg21[%c0_16, %c0_17, %c0_18] : memref<2x8x16xbf16, #tpu.memory_space<vmem>>, vector<1x8x16xbf16>
    %49 = vector.shape_cast %48 : vector<1x8x16xbf16> to vector<8x16xbf16>
    %50 = vector.shape_cast %47 : vector<8x16xbf16> to vector<1x8x16xbf16>
    tpu.vector_store %arg21[%c0_16, %c0_17, %c0_18], %50 {strides = array<i32>} : memref<2x8x16xbf16, #tpu.memory_space<vmem>>, vector<1x8x16xbf16>,
    %51 = vector.extract_strided_slice %46 {offsets = [0, 16], sizes = [8, 16], strides = [1, 1]} : vector<8x32xbf16> to vector<8x16xbf16>
    %c1 = arith.constant 1 : index
    %c0_19 = arith.constant 0 : index
    %c0_20 = arith.constant 0 : index
    %52 = vector.load %arg21[%c1, %c0_19, %c0_20] : memref<2x8x16xbf16, #tpu.memory_space<vmem>>, vector<1x8x16xbf16>
    %53 = vector.shape_cast %52 : vector<1x8x16xbf16> to vector<8x16xbf16>
    %54 = vector.shape_cast %51 : vector<8x16xbf16> to vector<1x8x16xbf16>
    tpu.vector_store %arg21[%c1, %c0_19, %c0_20], %54 {strides = array<i32>} : memref<2x8x16xbf16, #tpu.memory_space<vmem>>, vector<1x8x16xbf16>,
    %c0_i32_21 = arith.constant 0 : i32
    %c2_i32 = arith.constant 2 : i32
    %55 = arith.addi %c0_i32_21, %c2_i32 : i32
    %c1_i32 = arith.constant 1 : i32
    scf.for %arg26 = %c0_i32_21 to %55 step %c1_i32  : i32 {
      %132 = arith.index_cast %arg26 : i32 to index
      %c0_65 = arith.constant 0 : index
      %c0_66 = arith.constant 0 : index
      %133 = vector.load %arg21[%132, %c0_65, %c0_66] : memref<2x8x16xbf16, #tpu.memory_space<vmem>>, vector<1x8x16xbf16>
      %134 = vector.shape_cast %133 : vector<1x8x16xbf16> to vector<8x16xbf16>
      %135 = arith.index_cast %arg26 : i32 to index
      %c0_67 = arith.constant 0 : index
      %c0_68 = arith.constant 0 : index
      %136 = vector.load %arg22[%135, %c0_67, %c0_68] : memref<2x8x16xbf16, #tpu.memory_space<vmem>>, vector<1x8x16xbf16>
      %137 = vector.shape_cast %136 : vector<1x8x16xbf16> to vector<8x16xbf16>
      %cst_69 = arith.constant dense<0.000000e+00> : vector<8x8xf32>
      %138 = tpu.matmul %134, %137, %cst_69 {dimension_numbers = #tpu.dot_dimension_numbers<[1], [1], [0], [0], [0, 0, 1, 0], [], []>} : vector<8x16xbf16>, vector<8x16xbf16>, vector<8x8xf32> -> vector<8x8xf32>
      %c0_70 = arith.constant 0 : index
      %139 = arith.index_cast %arg26 : i32 to index
      %c0_71 = arith.constant 0 : index
      %c0_72 = arith.constant 0 : index
      %140 = vector.load %arg3[%c0_70, %139, %c0_71, %c0_72] : memref<1x2x8x8xbf16, #tpu.memory_space<vmem>>, vector<1x1x8x8xbf16>
      %141 = vector.shape_cast %140 : vector<1x1x8x8xbf16> to vector<8x8xbf16>
      %142 = arith.extf %141 : vector<8x8xbf16> to vector<8x8xf32>
      %143 = arith.addf %138, %142 : vector<8x8xf32>
      %cst_73 = arith.constant dense<0xFF800000> : vector<8xf32>
      %144 = vector.multi_reduction <maximumf>, %143, %cst_73 [1] : vector<8x8xf32> to vector<8xf32>
      %145 = vector.shape_cast %144 : vector<8xf32> to vector<8x1xf32>
      %146 = vector.broadcast %145 : vector<8x1xf32> to vector<8x8xf32>
      %147 = arith.subf %143, %146 : vector<8x8xf32>
      %148 = math.exp %147 : vector<8x8xf32>
      %cst_74 = arith.constant dense<0.000000e+00> : vector<8xf32>
      %149 = vector.multi_reduction <add>, %148, %cst_74 [1] : vector<8x8xf32> to vector<8xf32>
      %150 = vector.shape_cast %149 : vector<8xf32> to vector<8x1xf32>
      %151 = tpu.reciprocal %150 {approx = true} : vector<8x1xf32> -> vector<8x1xf32>
      %152 = vector.broadcast %151 : vector<8x1xf32> to vector<8x8xf32>
      %153 = arith.mulf %148, %152 : vector<8x8xf32>
      %154 = arith.truncf %153 : vector<8x8xf32> to vector<8x8xbf16>
      %155 = arith.index_cast %arg26 : i32 to index
      %c0_75 = arith.constant 0 : index
      %c0_76 = arith.constant 0 : index
      %156 = vector.load %arg23[%155, %c0_75, %c0_76] : memref<2x8x16xbf16, #tpu.memory_space<vmem>>, vector<1x8x16xbf16>
      %157 = vector.shape_cast %156 : vector<1x8x16xbf16> to vector<8x16xbf16>
      %cst_77 = arith.constant dense<0.000000e+00> : vector<8x16xf32>
      %158 = tpu.matmul %154, %157, %cst_77 {dimension_numbers = #tpu.dot_dimension_numbers<[1], [0], [0], [1], [0, 0, 1, 1], [], []>} : vector<8x8xbf16>, vector<8x16xbf16>, vector<8x16xf32> -> vector<8x16xf32>
      %159 = arith.truncf %158 : vector<8x16xf32> to vector<8x16xbf16>
      %160 = arith.index_cast %arg26 : i32 to index
      %c0_78 = arith.constant 0 : index
      %c0_79 = arith.constant 0 : index
      %161 = vector.load %arg24[%160, %c0_78, %c0_79] : memref<2x8x16xbf16, #tpu.memory_space<vmem>>, vector<1x8x16xbf16>
      %162 = vector.shape_cast %161 : vector<1x8x16xbf16> to vector<8x16xbf16>
      %163 = vector.shape_cast %159 : vector<8x16xbf16> to vector<1x8x16xbf16>
      tpu.vector_store %arg24[%160, %c0_78, %c0_79], %163 {strides = array<i32>} : memref<2x8x16xbf16, #tpu.memory_space<vmem>>, vector<1x8x16xbf16>,
    }
    %c2_i32_22 = arith.constant 2 : i32
    %c0_23 = arith.constant 0 : index
    %c0_24 = arith.constant 0 : index
    %c0_25 = arith.constant 0 : index
    %56 = vector.load %arg24[%c0_23, %c0_24, %c0_25] : memref<2x8x16xbf16, #tpu.memory_space<vmem>>, vector<1x8x16xbf16>
    %57 = vector.shape_cast %56 : vector<1x8x16xbf16> to vector<8x16xbf16>
    %c0_26 = arith.constant 0 : index
    %c0_27 = arith.constant 0 : index
    %58 = vector.load %arg25[%c0_26, %c0_27] : memref<8x32xbf16, #tpu.memory_space<vmem>>, vector<8x16xbf16>
    tpu.vector_store %arg25[%c0_26, %c0_27], %57 {strides = array<i32>} : memref<8x32xbf16, #tpu.memory_space<vmem>>, vector<8x16xbf16>,
    %c1_28 = arith.constant 1 : index
    %c0_29 = arith.constant 0 : index
    %c0_30 = arith.constant 0 : index
    %59 = vector.load %arg24[%c1_28, %c0_29, %c0_30] : memref<2x8x16xbf16, #tpu.memory_space<vmem>>, vector<1x8x16xbf16>
    %60 = vector.shape_cast %59 : vector<1x8x16xbf16> to vector<8x16xbf16>
    %c0_31 = arith.constant 0 : index
    %c16 = arith.constant 16 : index
    %61 = vector.load %arg25[%c0_31, %c16] : memref<8x32xbf16, #tpu.memory_space<vmem>>, vector<8x16xbf16>
    tpu.vector_store %arg25[%c0_31, %c16], %60 {strides = array<i32>} : memref<8x32xbf16, #tpu.memory_space<vmem>>, vector<8x16xbf16>,
    %c0_32 = arith.constant 0 : index
    %c0_33 = arith.constant 0 : index
    %62 = vector.load %arg25[%c0_32, %c0_33] : memref<8x32xbf16, #tpu.memory_space<vmem>>, vector<8x32xbf16>
    %c0_34 = arith.constant 0 : index
    %c0_35 = arith.constant 0 : index
    %63 = vector.load %arg10[%c0_34, %c0_35] : memref<32x32xbf16, #tpu.memory_space<vmem>>, vector<32x32xbf16>
    %cst_36 = arith.constant dense<0.000000e+00> : vector<8x32xf32>
    %64 = tpu.matmul %62, %63, %cst_36 {dimension_numbers = #tpu.dot_dimension_numbers<[1], [0], [0], [1], [0, 0, 1, 1], [], []>} : vector<8x32xbf16>, vector<32x32xbf16>, vector<8x32xf32> -> vector<8x32xf32>
    %c0_37 = arith.constant 0 : index
    %c0_38 = arith.constant 0 : index
    %65 = vector.load %arg11[%c0_37, %c0_38] : memref<1x32xf32, #tpu.memory_space<vmem>>, vector<1x32xf32>
    %66 = vector.shape_cast %65 : vector<1x32xf32> to vector<32xf32>
    %67 = vector.shape_cast %66 : vector<32xf32> to vector<1x32xf32>
    %68 = vector.broadcast %67 : vector<1x32xf32> to vector<8x32xf32>
    %69 = arith.addf %64, %68 : vector<8x32xf32>
    %70 = arith.addf %69, %11 : vector<8x32xf32>
    %c0_39 = arith.constant 0 : index
    %c0_40 = arith.constant 0 : index
    %71 = vector.load %arg14[%c0_39, %c0_40] : memref<1x32xf32, #tpu.memory_space<vmem>>, vector<1x32xf32>
    %72 = vector.shape_cast %71 : vector<1x32xf32> to vector<32xf32>
    %c0_41 = arith.constant 0 : index
    %c0_42 = arith.constant 0 : index
    %73 = vector.load %arg15[%c0_41, %c0_42] : memref<1x32xf32, #tpu.memory_space<vmem>>, vector<1x32xf32>
    %74 = vector.shape_cast %73 : vector<1x32xf32> to vector<32xf32>
    %cst_43 = arith.constant dense<0.000000e+00> : vector<8xf32>
    %75 = vector.multi_reduction <add>, %70, %cst_43 [1] : vector<8x32xf32> to vector<8xf32>
    %76 = vector.shape_cast %75 : vector<8xf32> to vector<8x1xf32>
    %cst_44 = arith.constant 3.200000e+01 : f32
    %77 = vector.broadcast %cst_44 : f32 to vector<8x1xf32>
    %78 = arith.divf %76, %77 : vector<8x1xf32>
    %79 = vector.broadcast %78 : vector<8x1xf32> to vector<8x32xf32>
    %80 = arith.subf %70, %79 : vector<8x32xf32>
    %81 = arith.mulf %80, %80 : vector<8x32xf32>
    %cst_45 = arith.constant dense<0.000000e+00> : vector<8xf32>
    %82 = vector.multi_reduction <add>, %81, %cst_45 [1] : vector<8x32xf32> to vector<8xf32>
    %83 = vector.shape_cast %82 : vector<8xf32> to vector<8x1xf32>
    %cst_46 = arith.constant 3.200000e+01 : f32
    %84 = vector.broadcast %cst_46 : f32 to vector<8x1xf32>
    %85 = arith.divf %83, %84 : vector<8x1xf32>
    %86 = vector.broadcast %78 : vector<8x1xf32> to vector<8x32xf32>
    %87 = arith.subf %70, %86 : vector<8x32xf32>
    %cst_47 = arith.constant 9.99999974E-6 : f32
    %88 = vector.broadcast %cst_47 : f32 to vector<8x1xf32>
    %89 = arith.addf %85, %88 : vector<8x1xf32>
    %90 = math.rsqrt %89 : vector<8x1xf32>
    %91 = vector.broadcast %90 : vector<8x1xf32> to vector<8x32xf32>
    %92 = arith.mulf %87, %91 : vector<8x32xf32>
    %93 = vector.shape_cast %72 : vector<32xf32> to vector<1x32xf32>
    %94 = vector.broadcast %93 : vector<1x32xf32> to vector<8x32xf32>
    %95 = arith.mulf %92, %94 : vector<8x32xf32>
    %96 = vector.shape_cast %74 : vector<32xf32> to vector<1x32xf32>
    %97 = vector.broadcast %96 : vector<1x32xf32> to vector<8x32xf32>
    %98 = arith.addf %95, %97 : vector<8x32xf32>
    %99 = arith.truncf %98 : vector<8x32xf32> to vector<8x32xbf16>
    %c0_48 = arith.constant 0 : index
    %c0_49 = arith.constant 0 : index
    %100 = vector.load %arg16[%c0_48, %c0_49] : memref<32x64xbf16, #tpu.memory_space<vmem>>, vector<32x64xbf16>
    %cst_50 = arith.constant dense<0.000000e+00> : vector<8x64xf32>
    %101 = tpu.matmul %99, %100, %cst_50 {dimension_numbers = #tpu.dot_dimension_numbers<[1], [0], [0], [1], [0, 0, 1, 1], [], []>} : vector<8x32xbf16>, vector<32x64xbf16>, vector<8x64xf32> -> vector<8x64xf32>
    %c0_51 = arith.constant 0 : index
    %c0_52 = arith.constant 0 : index
    %102 = vector.load %arg17[%c0_51, %c0_52] : memref<1x64xf32, #tpu.memory_space<vmem>>, vector<1x64xf32>
    %103 = vector.shape_cast %102 : vector<1x64xf32> to vector<64xf32>
    %104 = vector.shape_cast %103 : vector<64xf32> to vector<1x64xf32>
    %105 = vector.broadcast %104 : vector<1x64xf32> to vector<8x64xf32>
    %106 = arith.addf %101, %105 : vector<8x64xf32>
    %cst_53 = arith.constant 5.000000e-01 : f32
    %107 = vector.broadcast %cst_53 : f32 to vector<8x64xf32>
    %108 = arith.mulf %107, %106 : vector<8x64xf32>
    %cst_54 = arith.constant 4.471500e-02 : f32
    %109 = vector.broadcast %cst_54 : f32 to vector<8x64xf32>
    %110 = arith.mulf %109, %106 : vector<8x64xf32>
    %111 = arith.mulf %110, %106 : vector<8x64xf32>
    %112 = arith.mulf %111, %106 : vector<8x64xf32>
    %113 = arith.addf %106, %112 : vector<8x64xf32>
    %cst_55 = arith.constant 0.797884583 : f32
    %114 = vector.broadcast %cst_55 : f32 to vector<8x64xf32>
    %115 = arith.mulf %114, %113 : vector<8x64xf32>
    %116 = math.tanh %115 : vector<8x64xf32>
    %cst_56 = arith.constant 1.000000e+00 : f32
    %117 = vector.broadcast %cst_56 : f32 to vector<8x64xf32>
    %118 = arith.addf %117, %116 : vector<8x64xf32>
    %119 = arith.mulf %108, %118 : vector<8x64xf32>
    %120 = arith.truncf %119 : vector<8x64xf32> to vector<8x64xbf16>
    %c0_57 = arith.constant 0 : index
    %c0_58 = arith.constant 0 : index
    %121 = vector.load %arg18[%c0_57, %c0_58] : memref<64x32xbf16, #tpu.memory_space<vmem>>, vector<64x32xbf16>
    %cst_59 = arith.constant dense<0.000000e+00> : vector<8x32xf32>
    %122 = tpu.matmul %120, %121, %cst_59 {dimension_numbers = #tpu.dot_dimension_numbers<[1], [0], [0], [1], [0, 0, 1, 1], [], []>} : vector<8x64xbf16>, vector<64x32xbf16>, vector<8x32xf32> -> vector<8x32xf32>
    %c0_60 = arith.constant 0 : index
    %c0_61 = arith.constant 0 : index
    %123 = vector.load %arg19[%c0_60, %c0_61] : memref<1x32xf32, #tpu.memory_space<vmem>>, vector<1x32xf32>
    %124 = vector.shape_cast %123 : vector<1x32xf32> to vector<32xf32>
    %125 = vector.shape_cast %124 : vector<32xf32> to vector<1x32xf32>
    %126 = vector.broadcast %125 : vector<1x32xf32> to vector<8x32xf32>
    %127 = arith.addf %122, %126 : vector<8x32xf32>
    %128 = arith.addf %127, %70 : vector<8x32xf32>
    %c0_62 = arith.constant 0 : index
    %c0_63 = arith.constant 0 : index
    %c0_64 = arith.constant 0 : index
    %129 = vector.load %arg20[%c0_62, %c0_63, %c0_64] : memref<1x8x32xf32, #tpu.memory_space<vmem>>, vector<1x8x32xf32>
    %130 = vector.shape_cast %129 : vector<1x8x32xf32> to vector<8x32xf32>
    %131 = vector.shape_cast %128 : vector<8x32xf32> to vector<1x8x32xf32>
    tpu.vector_store %arg20[%c0_62, %c0_63, %c0_64], %131 {strides = array<i32>} : memref<1x8x32xf32, #tpu.memory_space<vmem>>, vector<1x8x32xf32>,
    return
  }
  func.func @transform_0(%arg0: i32, %arg1: i32) -> (i32, i32, i32) {
    %c0_i32 = arith.constant 0 : i32
    %c0_i32_0 = arith.constant 0 : i32
    %c0_i32_1 = arith.constant 0 : i32
    return %arg0, %c0_i32, %c0_i32_0 : i32, i32, i32
  }
  func.func @transform_1(%arg0: i32, %arg1: i32) -> (i32, i32, i32, i32) {
    %c0_i32 = arith.constant 0 : i32
    %c0_i32_0 = arith.constant 0 : i32
    %c0_i32_1 = arith.constant 0 : i32
    return %arg0, %c0_i32, %arg1, %c0_i32_0 : i32, i32, i32, i32
  }
  func.func @transform_2(%arg0: i32, %arg1: i32) -> (i32, i32) {
    %c0_i32 = arith.constant 0 : i32
    %c0_i32_0 = arith.constant 0 : i32
    %c0_i32_1 = arith.constant 0 : i32
    return %c0_i32, %c0_i32_0 : i32, i32
  }
  func.func @transform_3(%arg0: i32, %arg1: i32) -> (i32, i32) {
    %c0_i32 = arith.constant 0 : i32
    %c0_i32_0 = arith.constant 0 : i32
    %c0_i32_1 = arith.constant 0 : i32
    return %c0_i32, %c0_i32_0 : i32, i32
  }
  func.func @transform_4(%arg0: i32, %arg1: i32) -> (i32, i32) {
    %c0_i32 = arith.constant 0 : i32
    %c0_i32_0 = arith.constant 0 : i32
    %c0_i32_1 = arith.constant 0 : i32
    return %c0_i32, %c0_i32_0 : i32, i32
  }
  func.func @transform_5(%arg0: i32, %arg1: i32) -> (i32, i32) {
    %c0_i32 = arith.constant 0 : i32
    %c0_i32_0 = arith.constant 0 : i32
    %c0_i32_1 = arith.constant 0 : i32
    return %c0_i32, %c0_i32_0 : i32, i32
  }
  func.func @transform_6(%arg0: i32, %arg1: i32) -> (i32, i32) {
    %c0_i32 = arith.constant 0 : i32
    %c0_i32_0 = arith.constant 0 : i32
    %c0_i32_1 = arith.constant 0 : i32
    return %c0_i32, %c0_i32_0 : i32, i32
  }
  func.func @transform_7(%arg0: i32, %arg1: i32) -> (i32, i32) {
    %c0_i32 = arith.constant 0 : i32
    %c0_i32_0 = arith.constant 0 : i32
    %c0_i32_1 = arith.constant 0 : i32
    return %c0_i32, %c0_i32_0 : i32, i32
  }
  func.func @transform_8(%arg0: i32, %arg1: i32) -> (i32, i32) {
    %c0_i32 = arith.constant 0 : i32
    %c0_i32_0 = arith.constant 0 : i32
    %c0_i32_1 = arith.constant 0 : i32
    return %c0_i32, %c0_i32_0 : i32, i32
  }
  func.func @transform_9(%arg0: i32, %arg1: i32) -> (i32, i32) {
    %c0_i32 = arith.constant 0 : i32
    %c0_i32_0 = arith.constant 0 : i32
    %c0_i32_1 = arith.constant 0 : i32
    return %c0_i32, %c0_i32_0 : i32, i32
  }
  func.func @transform_10(%arg0: i32, %arg1: i32) -> (i32, i32) {
    %c0_i32 = arith.constant 0 : i32
    %c0_i32_0 = arith.constant 0 : i32
    %c0_i32_1 = arith.constant 0 : i32
    return %c0_i32, %c0_i32_0 : i32, i32
  }
  func.func @transform_11(%arg0: i32, %arg1: i32) -> (i32, i32) {
    %c0_i32 = arith.constant 0 : i32
    %c0_i32_0 = arith.constant 0 : i32
    %c0_i32_1 = arith.constant 0 : i32
    return %c0_i32, %c0_i32_0 : i32, i32
  }
  func.func @transform_12(%arg0: i32, %arg1: i32) -> (i32, i32) {
    %c0_i32 = arith.constant 0 : i32
    %c0_i32_0 = arith.constant 0 : i32
    %c0_i32_1 = arith.constant 0 : i32
    return %c0_i32, %c0_i32_0 : i32, i32
  }
  func.func @transform_13(%arg0: i32, %arg1: i32) -> (i32, i32) {
    %c0_i32 = arith.constant 0 : i32
    %c0_i32_0 = arith.constant 0 : i32
    %c0_i32_1 = arith.constant 0 : i32
    return %c0_i32, %c0_i32_0 : i32, i32
  }
  func.func @transform_14(%arg0: i32, %arg1: i32) -> (i32, i32) {
    %c0_i32 = arith.constant 0 : i32
    %c0_i32_0 = arith.constant 0 : i32
    %c0_i32_1 = arith.constant 0 : i32
    return %c0_i32, %c0_i32_0 : i32, i32
  }
  func.func @transform_15(%arg0: i32, %arg1: i32) -> (i32, i32) {
    %c0_i32 = arith.constant 0 : i32
    %c0_i32_0 = arith.constant 0 : i32
    %c0_i32_1 = arith.constant 0 : i32
    return %c0_i32, %c0_i32_0 : i32, i32
  }
  func.func @transform_16(%arg0: i32, %arg1: i32) -> (i32, i32) {
    %c0_i32 = arith.constant 0 : i32
    %c0_i32_0 = arith.constant 0 : i32
    %c0_i32_1 = arith.constant 0 : i32
    return %c0_i32, %c0_i32_0 : i32, i32
  }
  func.func @transform_17(%arg0: i32, %arg1: i32) -> (i32, i32) {
    %c0_i32 = arith.constant 0 : i32
    %c0_i32_0 = arith.constant 0 : i32
    %c0_i32_1 = arith.constant 0 : i32
    return %c0_i32, %c0_i32_0 : i32, i32
  }
  func.func @transform_18(%arg0: i32, %arg1: i32) -> (i32, i32, i32) {
    %c0_i32 = arith.constant 0 : i32
    %c0_i32_0 = arith.constant 0 : i32
    return %arg0, %arg1, %c0_i32 : i32, i32, i32
  }
}

module attributes {stable_mosaic.version = 11 : i64} {
  func.func @encoder_layer_kernel(%arg0: i32, %arg1: i32, %arg2: memref<1x8x32xf32, #tpu.memory_space<vmem>>, %arg3: memref<1x2x8x8xbf16, #tpu.memory_space<vmem>>, %arg4: memref<32x32xbf16, #tpu.memory_space<vmem>>, %arg5: memref<1x32xf32, #tpu.memory_space<vmem>>, %arg6: memref<32x32xbf16, #tpu.memory_space<vmem>>, %arg7: memref<1x32xf32, #tpu.memory_space<vmem>>, %arg8: memref<32x32xbf16, #tpu.memory_space<vmem>>, %arg9: memref<1x32xf32, #tpu.memory_space<vmem>>, %arg10: memref<32x32xbf16, #tpu.memory_space<vmem>>, %arg11: memref<1x32xf32, #tpu.memory_space<vmem>>, %arg12: memref<1x32xf32, #tpu.memory_space<vmem>>, %arg13: memref<1x32xf32, #tpu.memory_space<vmem>>, %arg14: memref<1x32xf32, #tpu.memory_space<vmem>>, %arg15: memref<1x32xf32, #tpu.memory_space<vmem>>, %arg16: memref<32x64xbf16, #tpu.memory_space<vmem>>, %arg17: memref<1x64xf32, #tpu.memory_space<vmem>>, %arg18: memref<64x32xbf16, #tpu.memory_space<vmem>>, %arg19: memref<1x32xf32, #tpu.memory_space<vmem>>, %arg20: memref<1x8x32xf32, #tpu.memory_space<vmem>>, %arg21: memref<2x8x16xbf16, #tpu.memory_space<vmem>>, %arg22: memref<2x8x16xbf16, #tpu.memory_space<vmem>>, %arg23: memref<2x8x16xbf16, #tpu.memory_space<vmem>>, %arg24: memref<2x8x16xbf16, #tpu.memory_space<vmem>>, %arg25: memref<8x32xbf16, #tpu.memory_space<vmem>>) attributes {dimension_semantics = [#tpu.dimension_semantics<parallel>, #tpu.dimension_semantics<arbitrary>], iteration_bounds = array<i64: 2, 1>, scalar_prefetch = 0 : i64, scratch_operands = 5 : i64, tpu.core_type = #tpu.core_type<tc>, window_params = [{transform_indices = @transform_0, window_bounds = array<i64: 1, 8, 32>}, {transform_indices = @transform_1, window_bounds = array<i64: 1, 2, 8, 8>}, {pipeline_mode = #tpu.pipeline_mode<synchronous>, transform_indices = @transform_2, window_bounds = array<i64: 32, 32>}, {pipeline_mode = #tpu.pipeline_mode<synchronous>, transform_indices = @transform_3, window_bounds = array<i64: 1, 32>}, {pipeline_mode = #tpu.pipeline_mode<synchronous>, transform_indices = @transform_4, window_bounds = array<i64: 32, 32>}, {pipeline_mode = #tpu.pipeline_mode<synchronous>, transform_indices = @transform_5, window_bounds = array<i64: 1, 32>}, {pipeline_mode = #tpu.pipeline_mode<synchronous>, transform_indices = @transform_6, window_bounds = array<i64: 32, 32>}, {pipeline_mode = #tpu.pipeline_mode<synchronous>, transform_indices = @transform_7, window_bounds = array<i64: 1, 32>}, {pipeline_mode = #tpu.pipeline_mode<synchronous>, transform_indices = @transform_8, window_bounds = array<i64: 32, 32>}, {pipeline_mode = #tpu.pipeline_mode<synchronous>, transform_indices = @transform_9, window_bounds = array<i64: 1, 32>}, {pipeline_mode = #tpu.pipeline_mode<synchronous>, transform_indices = @transform_10, window_bounds = array<i64: 1, 32>}, {pipeline_mode = #tpu.pipeline_mode<synchronous>, transform_indices = @transform_11, window_bounds = array<i64: 1, 32>}, {pipeline_mode = #tpu.pipeline_mode<synchronous>, transform_indices = @transform_12, window_bounds = array<i64: 1, 32>}, {pipeline_mode = #tpu.pipeline_mode<synchronous>, transform_indices = @transform_13, window_bounds = array<i64: 1, 32>}, {pipeline_mode = #tpu.pipeline_mode<synchronous>, transform_indices = @transform_14, window_bounds = array<i64: 32, 64>}, {pipeline_mode = #tpu.pipeline_mode<synchronous>, transform_indices = @transform_15, window_bounds = array<i64: 1, 64>}, {pipeline_mode = #tpu.pipeline_mode<synchronous>, transform_indices = @transform_16, window_bounds = array<i64: 64, 32>}, {pipeline_mode = #tpu.pipeline_mode<synchronous>, transform_indices = @transform_17, window_bounds = array<i64: 1, 32>}, {transform_indices = @transform_18, window_bounds = array<i64: 1, 8, 32>}]} {
    %c0 = arith.constant 0 : index
    %c0_0 = arith.constant 0 : index
    %0 = vector.load %arg12[%c0, %c0_0] : memref<1x32xf32, #tpu.memory_space<vmem>>, vector<1x32xf32>
    %1 = vector.shape_cast %0 : vector<1x32xf32> to vector<32xf32>
    %c0_1 = arith.constant 0 : index
    %c0_2 = arith.constant 0 : index
    %2 = vector.load %arg13[%c0_1, %c0_2] : memref<1x32xf32, #tpu.memory_space<vmem>>, vector<1x32xf32>
    %3 = vector.shape_cast %2 : vector<1x32xf32> to vector<32xf32>
    %c0_i32 = arith.constant 0 : i32
    %4 = arith.cmpi eq, %arg1, %c0_i32 : i32
    %5 = arith.extui %4 : i1 to i32
    %c0_i32_3 = arith.constant 0 : i32
    %6 = arith.cmpi ne, %5, %c0_i32_3 : i32
    scf.if %6 {
      %c0_i32_65 = arith.constant 0 : i32
      %c8_i32_66 = arith.constant 8 : i32
      %132 = arith.muli %c0_i32_65, %c8_i32_66 : i32
      %133 = tpu.assume_multiple %132, 8 : i32
      %c0_67 = arith.constant 0 : index
      %134 = arith.index_cast %133 : i32 to index
      %c0_68 = arith.constant 0 : index
      %135 = vector.load %arg2[%c0_67, %134, %c0_68] : memref<1x8x32xf32, #tpu.memory_space<vmem>>, vector<1x8x32xf32>
      %136 = vector.shape_cast %135 : vector<1x8x32xf32> to vector<8x32xf32>
      %cst_69 = arith.constant dense<0.000000e+00> : vector<8xf32>
      %137 = vector.multi_reduction <add>, %136, %cst_69 [1] : vector<8x32xf32> to vector<8xf32>
      %138 = vector.shape_cast %137 : vector<8xf32> to vector<8x1xf32>
      %cst_70 = arith.constant 3.200000e+01 : f32
      %139 = vector.broadcast %cst_70 : f32 to vector<8x1xf32>
      %140 = arith.divf %138, %139 : vector<8x1xf32>
      %141 = vector.broadcast %140 : vector<8x1xf32> to vector<8x32xf32>
      %142 = arith.subf %136, %141 : vector<8x32xf32>
      %143 = arith.mulf %142, %142 : vector<8x32xf32>
      %cst_71 = arith.constant dense<0.000000e+00> : vector<8xf32>
      %144 = vector.multi_reduction <add>, %143, %cst_71 [1] : vector<8x32xf32> to vector<8xf32>
      %145 = vector.shape_cast %144 : vector<8xf32> to vector<8x1xf32>
      %cst_72 = arith.constant 3.200000e+01 : f32
      %146 = vector.broadcast %cst_72 : f32 to vector<8x1xf32>
      %147 = arith.divf %145, %146 : vector<8x1xf32>
      %148 = vector.broadcast %140 : vector<8x1xf32> to vector<8x32xf32>
      %149 = arith.subf %136, %148 : vector<8x32xf32>
      %cst_73 = arith.constant 9.99999974E-6 : f32
      %150 = vector.broadcast %cst_73 : f32 to vector<8x1xf32>
      %151 = arith.addf %147, %150 : vector<8x1xf32>
      %152 = math.rsqrt %151 : vector<8x1xf32>
      %153 = vector.broadcast %152 : vector<8x1xf32> to vector<8x32xf32>
      %154 = arith.mulf %149, %153 : vector<8x32xf32>
      %155 = vector.shape_cast %1 : vector<32xf32> to vector<1x32xf32>
      %156 = vector.broadcast %155 : vector<1x32xf32> to vector<8x32xf32>
      %157 = arith.mulf %154, %156 : vector<8x32xf32>
      %158 = vector.shape_cast %3 : vector<32xf32> to vector<1x32xf32>
      %159 = vector.broadcast %158 : vector<1x32xf32> to vector<8x32xf32>
      %160 = arith.addf %157, %159 : vector<8x32xf32>
      %161 = arith.truncf %160 : vector<8x32xf32> to vector<8x32xbf16>
      %c0_74 = arith.constant 0 : index
      %c0_75 = arith.constant 0 : index
      %162 = vector.load %arg6[%c0_74, %c0_75] : memref<32x32xbf16, #tpu.memory_space<vmem>>, vector<32x32xbf16>
      %cst_76 = arith.constant dense<0.000000e+00> : vector<8x32xf32>
      %163 = tpu.matmul %161, %162, %cst_76 {dimension_numbers = #tpu.dot_dimension_numbers<[1], [0], [0], [1], [0, 0, 1, 1], [], []>} : vector<8x32xbf16>, vector<32x32xbf16>, vector<8x32xf32> -> vector<8x32xf32>
      %c0_77 = arith.constant 0 : index
      %c0_78 = arith.constant 0 : index
      %164 = vector.load %arg7[%c0_77, %c0_78] : memref<1x32xf32, #tpu.memory_space<vmem>>, vector<1x32xf32>
      %165 = vector.shape_cast %164 : vector<1x32xf32> to vector<32xf32>
      %166 = vector.shape_cast %165 : vector<32xf32> to vector<1x32xf32>
      %167 = vector.broadcast %166 : vector<1x32xf32> to vector<8x32xf32>
      %168 = arith.addf %163, %167 : vector<8x32xf32>
      %169 = arith.truncf %168 : vector<8x32xf32> to vector<8x32xbf16>
      %c0_79 = arith.constant 0 : index
      %c0_80 = arith.constant 0 : index
      %170 = vector.load %arg8[%c0_79, %c0_80] : memref<32x32xbf16, #tpu.memory_space<vmem>>, vector<32x32xbf16>
      %cst_81 = arith.constant dense<0.000000e+00> : vector<8x32xf32>
      %171 = tpu.matmul %161, %170, %cst_81 {dimension_numbers = #tpu.dot_dimension_numbers<[1], [0], [0], [1], [0, 0, 1, 1], [], []>} : vector<8x32xbf16>, vector<32x32xbf16>, vector<8x32xf32> -> vector<8x32xf32>
      %c0_82 = arith.constant 0 : index
      %c0_83 = arith.constant 0 : index
      %172 = vector.load %arg9[%c0_82, %c0_83] : memref<1x32xf32, #tpu.memory_space<vmem>>, vector<1x32xf32>
      %173 = vector.shape_cast %172 : vector<1x32xf32> to vector<32xf32>
      %174 = vector.shape_cast %173 : vector<32xf32> to vector<1x32xf32>
      %175 = vector.broadcast %174 : vector<1x32xf32> to vector<8x32xf32>
      %176 = arith.addf %171, %175 : vector<8x32xf32>
      %177 = arith.truncf %176 : vector<8x32xf32> to vector<8x32xbf16>
      %178 = vector.extract_strided_slice %169 {offsets = [0, 0], sizes = [8, 16], strides = [1, 1]} : vector<8x32xbf16> to vector<8x16xbf16>
      %c0_84 = arith.constant 0 : index
      %179 = arith.index_cast %133 : i32 to index
      %c0_85 = arith.constant 0 : index
      %180 = vector.load %arg22[%c0_84, %179, %c0_85] : memref<2x8x16xbf16, #tpu.memory_space<vmem>>, vector<1x8x16xbf16>
      %181 = vector.shape_cast %180 : vector<1x8x16xbf16> to vector<8x16xbf16>
      %182 = vector.shape_cast %178 : vector<8x16xbf16> to vector<1x8x16xbf16>
      tpu.vector_store %arg22[%c0_84, %179, %c0_85], %182 {strides = array<i32>} : memref<2x8x16xbf16, #tpu.memory_space<vmem>>, vector<1x8x16xbf16>,
      %183 = vector.extract_strided_slice %177 {offsets = [0, 0], sizes = [8, 16], strides = [1, 1]} : vector<8x32xbf16> to vector<8x16xbf16>
      %c0_86 = arith.constant 0 : index
      %184 = arith.index_cast %133 : i32 to index
      %c0_87 = arith.constant 0 : index
      %185 = vector.load %arg23[%c0_86, %184, %c0_87] : memref<2x8x16xbf16, #tpu.memory_space<vmem>>, vector<1x8x16xbf16>
      %186 = vector.shape_cast %185 : vector<1x8x16xbf16> to vector<8x16xbf16>
      %187 = vector.shape_cast %183 : vector<8x16xbf16> to vector<1x8x16xbf16>
      tpu.vector_store %arg23[%c0_86, %184, %c0_87], %187 {strides = array<i32>} : memref<2x8x16xbf16, #tpu.memory_space<vmem>>, vector<1x8x16xbf16>,
      %188 = vector.extract_strided_slice %169 {offsets = [0, 16], sizes = [8, 16], strides = [1, 1]} : vector<8x32xbf16> to vector<8x16xbf16>
      %c1_88 = arith.constant 1 : index
      %189 = arith.index_cast %133 : i32 to index
      %c0_89 = arith.constant 0 : index
      %190 = vector.load %arg22[%c1_88, %189, %c0_89] : memref<2x8x16xbf16, #tpu.memory_space<vmem>>, vector<1x8x16xbf16>
      %191 = vector.shape_cast %190 : vector<1x8x16xbf16> to vector<8x16xbf16>
      %192 = vector.shape_cast %188 : vector<8x16xbf16> to vector<1x8x16xbf16>
      tpu.vector_store %arg22[%c1_88, %189, %c0_89], %192 {strides = array<i32>} : memref<2x8x16xbf16, #tpu.memory_space<vmem>>, vector<1x8x16xbf16>,
      %193 = vector.extract_strided_slice %177 {offsets = [0, 16], sizes = [8, 16], strides = [1, 1]} : vector<8x32xbf16> to vector<8x16xbf16>
      %c1_90 = arith.constant 1 : index
      %194 = arith.index_cast %133 : i32 to index
      %c0_91 = arith.constant 0 : index
      %195 = vector.load %arg23[%c1_90, %194, %c0_91] : memref<2x8x16xbf16, #tpu.memory_space<vmem>>, vector<1x8x16xbf16>
      %196 = vector.shape_cast %195 : vector<1x8x16xbf16> to vector<8x16xbf16>
      %197 = vector.shape_cast %193 : vector<8x16xbf16> to vector<1x8x16xbf16>
      tpu.vector_store %arg23[%c1_90, %194, %c0_91], %197 {strides = array<i32>} : memref<2x8x16xbf16, #tpu.memory_space<vmem>>, vector<1x8x16xbf16>,
      %c1_i32_92 = arith.constant 1 : i32
    } else {
    }
    %c8_i32 = arith.constant 8 : i32
    %7 = arith.muli %arg1, %c8_i32 : i32
    %8 = tpu.assume_multiple %7, 8 : i32
    %c0_4 = arith.constant 0 : index
    %9 = arith.index_cast %8 : i32 to index
    %c0_5 = arith.constant 0 : index
    %10 = vector.load %arg2[%c0_4, %9, %c0_5] : memref<1x8x32xf32, #tpu.memory_space<vmem>>, vector<1x8x32xf32>
    %11 = vector.shape_cast %10 : vector<1x8x32xf32> to vector<8x32xf32>
    %cst = arith.constant dense<0.000000e+00> : vector<8xf32>
    %12 = vector.multi_reduction <add>, %11, %cst [1] : vector<8x32xf32> to vector<8xf32>
    %13 = vector.shape_cast %12 : vector<8xf32> to vector<8x1xf32>
    %cst_6 = arith.constant 3.200000e+01 : f32
    %14 = vector.broadcast %cst_6 : f32 to vector<8x1xf32>
    %15 = arith.divf %13, %14 : vector<8x1xf32>
    %16 = vector.broadcast %15 : vector<8x1xf32> to vector<8x32xf32>
    %17 = arith.subf %11, %16 : vector<8x32xf32>
    %18 = arith.mulf %17, %17 : vector<8x32xf32>
    %cst_7 = arith.constant dense<0.000000e+00> : vector<8xf32>
    %19 = vector.multi_reduction <add>, %18, %cst_7 [1] : vector<8x32xf32> to vector<8xf32>
    %20 = vector.shape_cast %19 : vector<8xf32> to vector<8x1xf32>
    %cst_8 = arith.constant 3.200000e+01 : f32
    %21 = vector.broadcast %cst_8 : f32 to vector<8x1xf32>
    %22 = arith.divf %20, %21 : vector<8x1xf32>
    %23 = vector.broadcast %15 : vector<8x1xf32> to vector<8x32xf32>
    %24 = arith.subf %11, %23 : vector<8x32xf32>
    %cst_9 = arith.constant 9.99999974E-6 : f32
    %25 = vector.broadcast %cst_9 : f32 to vector<8x1xf32>
    %26 = arith.addf %22, %25 : vector<8x1xf32>
    %27 = math.rsqrt %26 : vector<8x1xf32>
    %28 = vector.broadcast %27 : vector<8x1xf32> to vector<8x32xf32>
    %29 = arith.mulf %24, %28 : vector<8x32xf32>
    %30 = vector.shape_cast %1 : vector<32xf32> to vector<1x32xf32>
    %31 = vector.broadcast %30 : vector<1x32xf32> to vector<8x32xf32>
    %32 = arith.mulf %29, %31 : vector<8x32xf32>
    %33 = vector.shape_cast %3 : vector<32xf32> to vector<1x32xf32>
    %34 = vector.broadcast %33 : vector<1x32xf32> to vector<8x32xf32>
    %35 = arith.addf %32, %34 : vector<8x32xf32>
    %36 = arith.truncf %35 : vector<8x32xf32> to vector<8x32xbf16>
    %c0_10 = arith.constant 0 : index
    %c0_11 = arith.constant 0 : index
    %37 = vector.load %arg4[%c0_10, %c0_11] : memref<32x32xbf16, #tpu.memory_space<vmem>>, vector<32x32xbf16>
    %cst_12 = arith.constant dense<0.000000e+00> : vector<8x32xf32>
    %38 = tpu.matmul %36, %37, %cst_12 {dimension_numbers = #tpu.dot_dimension_numbers<[1], [0], [0], [1], [0, 0, 1, 1], [], []>} : vector<8x32xbf16>, vector<32x32xbf16>, vector<8x32xf32> -> vector<8x32xf32>
    %c0_13 = arith.constant 0 : index
    %c0_14 = arith.constant 0 : index
    %39 = vector.load %arg5[%c0_13, %c0_14] : memref<1x32xf32, #tpu.memory_space<vmem>>, vector<1x32xf32>
    %40 = vector.shape_cast %39 : vector<1x32xf32> to vector<32xf32>
    %41 = vector.shape_cast %40 : vector<32xf32> to vector<1x32xf32>
    %42 = vector.broadcast %41 : vector<1x32xf32> to vector<8x32xf32>
    %43 = arith.addf %38, %42 : vector<8x32xf32>
    %cst_15 = arith.constant 2.500000e-01 : f32
    %44 = vector.broadcast %cst_15 : f32 to vector<8x32xf32>
    %45 = arith.mulf %43, %44 : vector<8x32xf32>
    %46 = arith.truncf %45 : vector<8x32xf32> to vector<8x32xbf16>
    %47 = vector.extract_strided_slice %46 {offsets = [0, 0], sizes = [8, 16], strides = [1, 1]} : vector<8x32xbf16> to vector<8x16xbf16>
    %c0_16 = arith.constant 0 : index
    %c0_17 = arith.constant 0 : index
    %c0_18 = arith.constant 0 : index
    %48 = vector.load %arg21[%c0_16, %c0_17, %c0_18] : memref<2x8x16xbf16, #tpu.memory_space<vmem>>, vector<1x8x16xbf16>
    %49 = vector.shape_cast %48 : vector<1x8x16xbf16> to vector<8x16xbf16>
    %50 = vector.shape_cast %47 : vector<8x16xbf16> to vector<1x8x16xbf16>
    tpu.vector_store %arg21[%c0_16, %c0_17, %c0_18], %50 {strides = array<i32>} : memref<2x8x16xbf16, #tpu.memory_space<vmem>>, vector<1x8x16xbf16>,
    %51 = vector.extract_strided_slice %46 {offsets = [0, 16], sizes = [8, 16], strides = [1, 1]} : vector<8x32xbf16> to vector<8x16xbf16>
    %c1 = arith.constant 1 : index
    %c0_19 = arith.constant 0 : index
    %c0_20 = arith.constant 0 : index
    %52 = vector.load %arg21[%c1, %c0_19, %c0_20] : memref<2x8x16xbf16, #tpu.memory_space<vmem>>, vector<1x8x16xbf16>
    %53 = vector.shape_cast %52 : vector<1x8x16xbf16> to vector<8x16xbf16>
    %54 = vector.shape_cast %51 : vector<8x16xbf16> to vector<1x8x16xbf16>
    tpu.vector_store %arg21[%c1, %c0_19, %c0_20], %54 {strides = array<i32>} : memref<2x8x16xbf16, #tpu.memory_space<vmem>>, vector<1x8x16xbf16>,
    %c0_i32_21 = arith.constant 0 : i32
    %c2_i32 = arith.constant 2 : i32
    %55 = arith.addi %c0_i32_21, %c2_i32 : i32
    %c1_i32 = arith.constant 1 : i32
    scf.for %arg26 = %c0_i32_21 to %55 step %c1_i32  : i32 {
      %132 = arith.index_cast %arg26 : i32 to index
      %c0_65 = arith.constant 0 : index
      %c0_66 = arith.constant 0 : index
      %133 = vector.load %arg21[%132, %c0_65, %c0_66] : memref<2x8x16xbf16, #tpu.memory_space<vmem>>, vector<1x8x16xbf16>
      %134 = vector.shape_cast %133 : vector<1x8x16xbf16> to vector<8x16xbf16>
      %135 = arith.index_cast %arg26 : i32 to index
      %c0_67 = arith.constant 0 : index
      %c0_68 = arith.constant 0 : index
      %136 = vector.load %arg22[%135, %c0_67, %c0_68] : memref<2x8x16xbf16, #tpu.memory_space<vmem>>, vector<1x8x16xbf16>
      %137 = vector.shape_cast %136 : vector<1x8x16xbf16> to vector<8x16xbf16>
      %cst_69 = arith.constant dense<0.000000e+00> : vector<8x8xf32>
      %138 = tpu.matmul %134, %137, %cst_69 {dimension_numbers = #tpu.dot_dimension_numbers<[1], [1], [0], [0], [0, 0, 1, 0], [], []>} : vector<8x16xbf16>, vector<8x16xbf16>, vector<8x8xf32> -> vector<8x8xf32>
      %c0_70 = arith.constant 0 : index
      %139 = arith.index_cast %arg26 : i32 to index
      %c0_71 = arith.constant 0 : index
      %c0_72 = arith.constant 0 : index
      %140 = vector.load %arg3[%c0_70, %139, %c0_71, %c0_72] : memref<1x2x8x8xbf16, #tpu.memory_space<vmem>>, vector<1x1x8x8xbf16>
      %141 = vector.shape_cast %140 : vector<1x1x8x8xbf16> to vector<8x8xbf16>
      %142 = arith.extf %141 : vector<8x8xbf16> to vector<8x8xf32>
      %143 = arith.addf %138, %142 : vector<8x8xf32>
      %cst_73 = arith.constant dense<0xFF800000> : vector<8xf32>
      %144 = vector.multi_reduction <maximumf>, %143, %cst_73 [1] : vector<8x8xf32> to vector<8xf32>
      %145 = vector.shape_cast %144 : vector<8xf32> to vector<8x1xf32>
      %146 = vector.broadcast %145 : vector<8x1xf32> to vector<8x8xf32>
      %147 = arith.subf %143, %146 : vector<8x8xf32>
      %148 = math.exp %147 : vector<8x8xf32>
      %cst_74 = arith.constant dense<0.000000e+00> : vector<8xf32>
      %149 = vector.multi_reduction <add>, %148, %cst_74 [1] : vector<8x8xf32> to vector<8xf32>
      %150 = vector.shape_cast %149 : vector<8xf32> to vector<8x1xf32>
      %151 = tpu.reciprocal %150 {approx = true} : vector<8x1xf32> -> vector<8x1xf32>
      %152 = vector.broadcast %151 : vector<8x1xf32> to vector<8x8xf32>
      %153 = arith.mulf %148, %152 : vector<8x8xf32>
      %154 = arith.truncf %153 : vector<8x8xf32> to vector<8x8xbf16>
      %155 = arith.index_cast %arg26 : i32 to index
      %c0_75 = arith.constant 0 : index
      %c0_76 = arith.constant 0 : index
      %156 = vector.load %arg23[%155, %c0_75, %c0_76] : memref<2x8x16xbf16, #tpu.memory_space<vmem>>, vector<1x8x16xbf16>
      %157 = vector.shape_cast %156 : vector<1x8x16xbf16> to vector<8x16xbf16>
      %cst_77 = arith.constant dense<0.000000e+00> : vector<8x16xf32>
      %158 = tpu.matmul %154, %157, %cst_77 {dimension_numbers = #tpu.dot_dimension_numbers<[1], [0], [0], [1], [0, 0, 1, 1], [], []>} : vector<8x8xbf16>, vector<8x16xbf16>, vector<8x16xf32> -> vector<8x16xf32>
      %159 = arith.truncf %158 : vector<8x16xf32> to vector<8x16xbf16>
      %160 = arith.index_cast %arg26 : i32 to index
      %c0_78 = arith.constant 0 : index
      %c0_79 = arith.constant 0 : index
      %161 = vector.load %arg24[%160, %c0_78, %c0_79] : memref<2x8x16xbf16, #tpu.memory_space<vmem>>, vector<1x8x16xbf16>
      %162 = vector.shape_cast %161 : vector<1x8x16xbf16> to vector<8x16xbf16>
      %163 = vector.shape_cast %159 : vector<8x16xbf16> to vector<1x8x16xbf16>
      tpu.vector_store %arg24[%160, %c0_78, %c0_79], %163 {strides = array<i32>} : memref<2x8x16xbf16, #tpu.memory_space<vmem>>, vector<1x8x16xbf16>,
    }
    %c2_i32_22 = arith.constant 2 : i32
    %c0_23 = arith.constant 0 : index
    %c0_24 = arith.constant 0 : index
    %c0_25 = arith.constant 0 : index
    %56 = vector.load %arg24[%c0_23, %c0_24, %c0_25] : memref<2x8x16xbf16, #tpu.memory_space<vmem>>, vector<1x8x16xbf16>
    %57 = vector.shape_cast %56 : vector<1x8x16xbf16> to vector<8x16xbf16>
    %c0_26 = arith.constant 0 : index
    %c0_27 = arith.constant 0 : index
    %58 = vector.load %arg25[%c0_26, %c0_27] : memref<8x32xbf16, #tpu.memory_space<vmem>>, vector<8x16xbf16>
    tpu.vector_store %arg25[%c0_26, %c0_27], %57 {strides = array<i32>} : memref<8x32xbf16, #tpu.memory_space<vmem>>, vector<8x16xbf16>,
    %c1_28 = arith.constant 1 : index
    %c0_29 = arith.constant 0 : index
    %c0_30 = arith.constant 0 : index
    %59 = vector.load %arg24[%c1_28, %c0_29, %c0_30] : memref<2x8x16xbf16, #tpu.memory_space<vmem>>, vector<1x8x16xbf16>
    %60 = vector.shape_cast %59 : vector<1x8x16xbf16> to vector<8x16xbf16>
    %c0_31 = arith.constant 0 : index
    %c16 = arith.constant 16 : index
    %61 = vector.load %arg25[%c0_31, %c16] : memref<8x32xbf16, #tpu.memory_space<vmem>>, vector<8x16xbf16>
    tpu.vector_store %arg25[%c0_31, %c16], %60 {strides = array<i32>} : memref<8x32xbf16, #tpu.memory_space<vmem>>, vector<8x16xbf16>,
    %c0_32 = arith.constant 0 : index
    %c0_33 = arith.constant 0 : index
    %62 = vector.load %arg25[%c0_32, %c0_33] : memref<8x32xbf16, #tpu.memory_space<vmem>>, vector<8x32xbf16>
    %c0_34 = arith.constant 0 : index
    %c0_35 = arith.constant 0 : index
    %63 = vector.load %arg10[%c0_34, %c0_35] : memref<32x32xbf16, #tpu.memory_space<vmem>>, vector<32x32xbf16>
    %cst_36 = arith.constant dense<0.000000e+00> : vector<8x32xf32>
    %64 = tpu.matmul %62, %63, %cst_36 {dimension_numbers = #tpu.dot_dimension_numbers<[1], [0], [0], [1], [0, 0, 1, 1], [], []>} : vector<8x32xbf16>, vector<32x32xbf16>, vector<8x32xf32> -> vector<8x32xf32>
    %c0_37 = arith.constant 0 : index
    %c0_38 = arith.constant 0 : index
    %65 = vector.load %arg11[%c0_37, %c0_38] : memref<1x32xf32, #tpu.memory_space<vmem>>, vector<1x32xf32>
    %66 = vector.shape_cast %65 : vector<1x32xf32> to vector<32xf32>
    %67 = vector.shape_cast %66 : vector<32xf32> to vector<1x32xf32>
    %68 = vector.broadcast %67 : vector<1x32xf32> to vector<8x32xf32>
    %69 = arith.addf %64, %68 : vector<8x32xf32>
    %70 = arith.addf %69, %11 : vector<8x32xf32>
    %c0_39 = arith.constant 0 : index
    %c0_40 = arith.constant 0 : index
    %71 = vector.load %arg14[%c0_39, %c0_40] : memref<1x32xf32, #tpu.memory_space<vmem>>, vector<1x32xf32>
    %72 = vector.shape_cast %71 : vector<1x32xf32> to vector<32xf32>
    %c0_41 = arith.constant 0 : index
    %c0_42 = arith.constant 0 : index
    %73 = vector.load %arg15[%c0_41, %c0_42] : memref<1x32xf32, #tpu.memory_space<vmem>>, vector<1x32xf32>
    %74 = vector.shape_cast %73 : vector<1x32xf32> to vector<32xf32>
    %cst_43 = arith.constant dense<0.000000e+00> : vector<8xf32>
    %75 = vector.multi_reduction <add>, %70, %cst_43 [1] : vector<8x32xf32> to vector<8xf32>
    %76 = vector.shape_cast %75 : vector<8xf32> to vector<8x1xf32>
    %cst_44 = arith.constant 3.200000e+01 : f32
    %77 = vector.broadcast %cst_44 : f32 to vector<8x1xf32>
    %78 = arith.divf %76, %77 : vector<8x1xf32>
    %79 = vector.broadcast %78 : vector<8x1xf32> to vector<8x32xf32>
    %80 = arith.subf %70, %79 : vector<8x32xf32>
    %81 = arith.mulf %80, %80 : vector<8x32xf32>
    %cst_45 = arith.constant dense<0.000000e+00> : vector<8xf32>
    %82 = vector.multi_reduction <add>, %81, %cst_45 [1] : vector<8x32xf32> to vector<8xf32>
    %83 = vector.shape_cast %82 : vector<8xf32> to vector<8x1xf32>
    %cst_46 = arith.constant 3.200000e+01 : f32
    %84 = vector.broadcast %cst_46 : f32 to vector<8x1xf32>
    %85 = arith.divf %83, %84 : vector<8x1xf32>
    %86 = vector.broadcast %78 : vector<8x1xf32> to vector<8x32xf32>
    %87 = arith.subf %70, %86 : vector<8x32xf32>
    %cst_47 = arith.constant 9.99999974E-6 : f32
    %88 = vector.broadcast %cst_47 : f32 to vector<8x1xf32>
    %89 = arith.addf %85, %88 : vector<8x1xf32>
    %90 = math.rsqrt %89 : vector<8x1xf32>
    %91 = vector.broadcast %90 : vector<8x1xf32> to vector<8x32xf32>
    %92 = arith.mulf %87, %91 : vector<8x32xf32>
    %93 = vector.shape_cast %72 : vector<32xf32> to vector<1x32xf32>
    %94 = vector.broadcast %93 : vector<1x32xf32> to vector<8x32xf32>
    %95 = arith.mulf %92, %94 : vector<8x32xf32>
    %96 = vector.shape_cast %74 : vector<32xf32> to vector<1x32xf32>
    %97 = vector.broadcast %96 : vector<1x32xf32> to vector<8x32xf32>
    %98 = arith.addf %95, %97 : vector<8x32xf32>
    %99 = arith.truncf %98 : vector<8x32xf32> to vector<8x32xbf16>
    %c0_48 = arith.constant 0 : index
    %c0_49 = arith.constant 0 : index
    %100 = vector.load %arg16[%c0_48, %c0_49] : memref<32x64xbf16, #tpu.memory_space<vmem>>, vector<32x64xbf16>
    %cst_50 = arith.constant dense<0.000000e+00> : vector<8x64xf32>
    %101 = tpu.matmul %99, %100, %cst_50 {dimension_numbers = #tpu.dot_dimension_numbers<[1], [0], [0], [1], [0, 0, 1, 1], [], []>} : vector<8x32xbf16>, vector<32x64xbf16>, vector<8x64xf32> -> vector<8x64xf32>
    %c0_51 = arith.constant 0 : index
    %c0_52 = arith.constant 0 : index
    %102 = vector.load %arg17[%c0_51, %c0_52] : memref<1x64xf32, #tpu.memory_space<vmem>>, vector<1x64xf32>
    %103 = vector.shape_cast %102 : vector<1x64xf32> to vector<64xf32>
    %104 = vector.shape_cast %103 : vector<64xf32> to vector<1x64xf32>
    %105 = vector.broadcast %104 : vector<1x64xf32> to vector<8x64xf32>
    %106 = arith.addf %101, %105 : vector<8x64xf32>
    %cst_53 = arith.constant 5.000000e-01 : f32
    %107 = vector.broadcast %cst_53 : f32 to vector<8x64xf32>
    %108 = arith.mulf %107, %106 : vector<8x64xf32>
    %cst_54 = arith.constant 4.471500e-02 : f32
    %109 = vector.broadcast %cst_54 : f32 to vector<8x64xf32>
    %110 = arith.mulf %109, %106 : vector<8x64xf32>
    %111 = arith.mulf %110, %106 : vector<8x64xf32>
    %112 = arith.mulf %111, %106 : vector<8x64xf32>
    %113 = arith.addf %106, %112 : vector<8x64xf32>
    %cst_55 = arith.constant 0.797884583 : f32
    %114 = vector.broadcast %cst_55 : f32 to vector<8x64xf32>
    %115 = arith.mulf %114, %113 : vector<8x64xf32>
    %116 = math.tanh %115 : vector<8x64xf32>
    %cst_56 = arith.constant 1.000000e+00 : f32
    %117 = vector.broadcast %cst_56 : f32 to vector<8x64xf32>
    %118 = arith.addf %117, %116 : vector<8x64xf32>
    %119 = arith.mulf %108, %118 : vector<8x64xf32>
    %120 = arith.truncf %119 : vector<8x64xf32> to vector<8x64xbf16>
    %c0_57 = arith.constant 0 : index
    %c0_58 = arith.constant 0 : index
    %121 = vector.load %arg18[%c0_57, %c0_58] : memref<64x32xbf16, #tpu.memory_space<vmem>>, vector<64x32xbf16>
    %cst_59 = arith.constant dense<0.000000e+00> : vector<8x32xf32>
    %122 = tpu.matmul %120, %121, %cst_59 {dimension_numbers = #tpu.dot_dimension_numbers<[1], [0], [0], [1], [0, 0, 1, 1], [], []>} : vector<8x64xbf16>, vector<64x32xbf16>, vector<8x32xf32> -> vector<8x32xf32>
    %c0_60 = arith.constant 0 : index
    %c0_61 = arith.constant 0 : index
    %123 = vector.load %arg19[%c0_60, %c0_61] : memref<1x32xf32, #tpu.memory_space<vmem>>, vector<1x32xf32>
    %124 = vector.shape_cast %123 : vector<1x32xf32> to vector<32xf32>
    %125 = vector.shape_cast %124 : vector<32xf32> to vector<1x32xf32>
    %126 = vector.broadcast %125 : vector<1x32xf32> to vector<8x32xf32>
    %127 = arith.addf %122, %126 : vector<8x32xf32>
    %128 = arith.addf %127, %70 : vector<8x32xf32>
    %c0_62 = arith.constant 0 : index
    %c0_63 = arith.constant 0 : index
    %c0_64 = arith.constant 0 : index
    %129 = vector.load %arg20[%c0_62, %c0_63, %c0_64] : memref<1x8x32xf32, #tpu.memory_space<vmem>>, vector<1x8x32xf32>
    %130 = vector.shape_cast %129 : vector<1x8x32xf32> to vector<8x32xf32>
    %131 = vector.shape_cast %128 : vector<8x32xf32> to vector<1x8x32xf32>
    tpu.vector_store %arg20[%c0_62, %c0_63, %c0_64], %131 {strides = array<i32>} : memref<1x8x32xf32, #tpu.memory_space<vmem>>, vector<1x8x32xf32>,
    return
  }
  func.func @transform_0(%arg0: i32, %arg1: i32) -> (i32, i32, i32) {
    %c0_i32 = arith.constant 0 : i32
    %c0_i32_0 = arith.constant 0 : i32
    %c0_i32_1 = arith.constant 0 : i32
    return %arg0, %c0_i32, %c0_i32_0 : i32, i32, i32
  }
  func.func @transform_1(%arg0: i32, %arg1: i32) -> (i32, i32, i32, i32) {
    %c0_i32 = arith.constant 0 : i32
    %c0_i32_0 = arith.constant 0 : i32
    %c0_i32_1 = arith.constant 0 : i32
    return %arg0, %c0_i32, %arg1, %c0_i32_0 : i32, i32, i32, i32
  }
  func.func @transform_2(%arg0: i32, %arg1: i32) -> (i32, i32) {
    %c0_i32 = arith.constant 0 : i32
    %c0_i32_0 = arith.constant 0 : i32
    %c0_i32_1 = arith.constant 0 : i32
    return %c0_i32, %c0_i32_0 : i32, i32
  }
  func.func @transform_3(%arg0: i32, %arg1: i32) -> (i32, i32) {
    %c0_i32 = arith.constant 0 : i32
    %c0_i32_0 = arith.constant 0 : i32
    %c0_i32_1 = arith.constant 0 : i32
    return %c0_i32, %c0_i32_0 : i32, i32
  }
  func.func @transform_4(%arg0: i32, %arg1: i32) -> (i32, i32) {
    %c0_i32 = arith.constant 0 : i32
    %c0_i32_0 = arith.constant 0 : i32
    %c0_i32_1 = arith.constant 0 : i32
    return %c0_i32, %c0_i32_0 : i32, i32
  }
  func.func @transform_5(%arg0: i32, %arg1: i32) -> (i32, i32) {
    %c0_i32 = arith.constant 0 : i32
    %c0_i32_0 = arith.constant 0 : i32
    %c0_i32_1 = arith.constant 0 : i32
    return %c0_i32, %c0_i32_0 : i32, i32
  }
  func.func @transform_6(%arg0: i32, %arg1: i32) -> (i32, i32) {
    %c0_i32 = arith.constant 0 : i32
    %c0_i32_0 = arith.constant 0 : i32
    %c0_i32_1 = arith.constant 0 : i32
    return %c0_i32, %c0_i32_0 : i32, i32
  }
  func.func @transform_7(%arg0: i32, %arg1: i32) -> (i32, i32) {
    %c0_i32 = arith.constant 0 : i32
    %c0_i32_0 = arith.constant 0 : i32
    %c0_i32_1 = arith.constant 0 : i32
    return %c0_i32, %c0_i32_0 : i32, i32
  }
  func.func @transform_8(%arg0: i32, %arg1: i32) -> (i32, i32) {
    %c0_i32 = arith.constant 0 : i32
    %c0_i32_0 = arith.constant 0 : i32
    %c0_i32_1 = arith.constant 0 : i32
    return %c0_i32, %c0_i32_0 : i32, i32
  }
  func.func @transform_9(%arg0: i32, %arg1: i32) -> (i32, i32) {
    %c0_i32 = arith.constant 0 : i32
    %c0_i32_0 = arith.constant 0 : i32
    %c0_i32_1 = arith.constant 0 : i32
    return %c0_i32, %c0_i32_0 : i32, i32
  }
  func.func @transform_10(%arg0: i32, %arg1: i32) -> (i32, i32) {
    %c0_i32 = arith.constant 0 : i32
    %c0_i32_0 = arith.constant 0 : i32
    %c0_i32_1 = arith.constant 0 : i32
    return %c0_i32, %c0_i32_0 : i32, i32
  }
  func.func @transform_11(%arg0: i32, %arg1: i32) -> (i32, i32) {
    %c0_i32 = arith.constant 0 : i32
    %c0_i32_0 = arith.constant 0 : i32
    %c0_i32_1 = arith.constant 0 : i32
    return %c0_i32, %c0_i32_0 : i32, i32
  }
  func.func @transform_12(%arg0: i32, %arg1: i32) -> (i32, i32) {
    %c0_i32 = arith.constant 0 : i32
    %c0_i32_0 = arith.constant 0 : i32
    %c0_i32_1 = arith.constant 0 : i32
    return %c0_i32, %c0_i32_0 : i32, i32
  }
  func.func @transform_13(%arg0: i32, %arg1: i32) -> (i32, i32) {
    %c0_i32 = arith.constant 0 : i32
    %c0_i32_0 = arith.constant 0 : i32
    %c0_i32_1 = arith.constant 0 : i32
    return %c0_i32, %c0_i32_0 : i32, i32
  }
  func.func @transform_14(%arg0: i32, %arg1: i32) -> (i32, i32) {
    %c0_i32 = arith.constant 0 : i32
    %c0_i32_0 = arith.constant 0 : i32
    %c0_i32_1 = arith.constant 0 : i32
    return %c0_i32, %c0_i32_0 : i32, i32
  }
  func.func @transform_15(%arg0: i32, %arg1: i32) -> (i32, i32) {
    %c0_i32 = arith.constant 0 : i32
    %c0_i32_0 = arith.constant 0 : i32
    %c0_i32_1 = arith.constant 0 : i32
    return %c0_i32, %c0_i32_0 : i32, i32
  }
  func.func @transform_16(%arg0: i32, %arg1: i32) -> (i32, i32) {
    %c0_i32 = arith.constant 0 : i32
    %c0_i32_0 = arith.constant 0 : i32
    %c0_i32_1 = arith.constant 0 : i32
    return %c0_i32, %c0_i32_0 : i32, i32
  }
  func.func @transform_17(%arg0: i32, %arg1: i32) -> (i32, i32) {
    %c0_i32 = arith.constant 0 : i32
    %c0_i32_0 = arith.constant 0 : i32
    %c0_i32_1 = arith.constant 0 : i32
    return %c0_i32, %c0_i32_0 : i32, i32
  }
  func.func @transform_18(%arg0: i32, %arg1: i32) -> (i32, i32, i32) {
    %c0_i32 = arith.constant 0 : i32
    %c0_i32_0 = arith.constant 0 : i32
    return %arg0, %arg1, %c0_i32 : i32, i32, i32
  }
}

</mosaic_0001>

<bundles_post_ra>
// kernel: tpu_custom_call.1
= control target key start
LH: loop header
LB: loop body
LE: loop exit
PB: predicated region body
PF: predicated region fallthrough
CT: control target
= control target key end

     0   :  { %s2605_s0 = inlined_call_operand.vmem [shape: f32[2,8,32], index: 0, kind: input, shape index: {}]   ;;  %s2606_s1 = inlined_call_operand.vmem [shape: bf16[2,2,8,8], index: 1, kind: input, shape index: {}]   ;;  %s2607_s2 = inlined_call_operand.vmem [shape: bf16[32,32], index: 2, kind: input, shape index: {}]   ;;  %s2608_s3 = inlined_call_operand.vmem [shape: f32[1,32], index: 3, kind: input, shape index: {}]   ;;  %s2609_s4 = inlined_call_operand.hbm [shape: bf16[32,32], index: 4, kind: input, shape index: {}]   ;;  %s2610_s5 = inlined_call_operand.vmem [shape: f32[1,32], index: 5, kind: input, shape index: {}]   ;;  %s2611_s6 = inlined_call_operand.hbm [shape: bf16[32,32], index: 6, kind: input, shape index: {}]   ;;  %s2612_s7 = inlined_call_operand.hbm [shape: f32[1,32], index: 7, kind: input, shape index: {}]   ;;  %s2613_s8 = inlined_call_operand.hbm [shape: bf16[32,32], index: 8, kind: input, shape index: {}]   ;;  %s2614_s9 = inlined_call_operand.hbm [shape: f32[1,32], index: 9, kind: input, shape index: {}]   ;;  %s2615_s10 = inlined_call_operand.vmem [shape: f32[1,32], index: 10, kind: input, shape index: {}]   ;;  %s2616_s11 = inlined_call_operand.vmem [shape: f32[1,32], index: 11, kind: input, shape index: {}]   ;;  %s2617_s12 = inlined_call_operand.vmem [shape: f32[1,32], index: 12, kind: input, shape index: {}]   ;;  %s2618_s13 = inlined_call_operand.vmem [shape: f32[1,32], index: 13, kind: input, shape index: {}]   ;;  %s2619_s14 = inlined_call_operand.vmem [shape: bf16[32,64], index: 14, kind: input, shape index: {}]   ;;  %s2620_s15 = inlined_call_operand.vmem [shape: f32[1,64], index: 15, kind: input, shape index: {}]   ;;  %s2621_s16 = inlined_call_operand.vmem [shape: bf16[64,32], index: 16, kind: input, shape index: {}]   ;;  %s2622_s17 = inlined_call_operand.vmem [shape: f32[1,32], index: 17, kind: input, shape index: {}]   ;;  %s2623_s18 = inlined_call_operand.hbm [shape: f32[2,8,32], index: 18, kind: output, shape index: {}]  }
   0x1   :  { %2640 = sst [smem:[#allocation29_spill]] %s2605_s0 }
   0x2   :  { %2641 = sst [smem:[#allocation30_spill]] %s2606_s1 }
   0x3   :  { %2642 = sst [smem:[#allocation31_spill]] %s2607_s2 }
   0x4   :  { %2643 = sst [smem:[#allocation32_spill]] %s2611_s6 }
   0x5   :  { %2644 = sst [smem:[#allocation33_spill]] %s2618_s13 }
   0x6   :  { %2645 = sst [smem:[#allocation34_spill]] %s2620_s15 }
   0x7   :  { %2646 = sst [smem:[#allocation35_spill]] %s2621_s16 }
   0x8   :  { %2647 = sst [smem:[#allocation36_spill]] %s2622_s17 }
   0x9   :  { %2648 = sst [smem:[#allocation37_spill]] %s2623_s18 }
   0xa   :  { %23 = vsyncpa [#allocation8], 0 }
   0xb   :  { %24 = vsyncpa [#allocation11], 0 }
   0xc   :  { %25 = vsyncpa [#allocation14], 0 }
   0xd   :  { %26 = vsyncpa [#allocation9], 0 }
   0xe   :  { %28 = vsyncpa [#allocation9 + $0x1], 0  ;;  %s2211_s27 = smov 0   ;;  %s2213_s28 = smov 0  }
   0xf   :  { %s2215_s29 = smov 0   ;;  %s2217_s30 = smov 0  }
  0x10   :  { %s2219_s0 = smov 0   ;;  %s2221_s19 = smov 0  }
  0x11 LB: > { %2649 = sst [smem:[#allocation21_spill]] %s2076_s27  ;;  %s1559_s1 = sadd.s32 4294967295, %s2096_s19   ;;  %s2096_s19 = sphi %s2221_s19, %s34_s19   ;;  %s2092_s0 = sphi %s2219_s0, %s2687_s0   ;;  %s2088_s30 = sphi %s2217_s30, %s2683_s30   ;;  %s2084_s29 = sphi %s2215_s29, %s2682_s29   ;;  %s2080_s28 = sphi %s2213_s28, %s2686_s28   ;;  %s2076_s27 = sphi %s2211_s27, %s2685_s27  }
  0x12   : > { %2650 = sst [smem:[#allocation22_spill]] %s2084_s29  ;;  %s1560_s20 = sadd.s32 4294967294, %s2096_s19  }
  0x13   : > { %2651 = sst [smem:[#allocation23_spill]] %s2092_s0  ;;  %s46_s21 = sadd.s32 1, %s2092_s0 }
  0x14   : > { %2652 = sst [smem:[#allocation24_spill]] %s2096_s19  ;;  %s445_s22 = sadd.s32 1, %s2084_s29 }
  0x15   : > { %p48_p0 = scmp.ge.s32.totalorder %s46_s21, 2  ;;  %p455_p1 = scmp.ne.s32.totalorder %s2084_s29, %s2080_s28 }
  0x16   : > { %p456_p2 = scmp.eq.s32.totalorder %s1559_s1, 1  ;;  %p461_p3 = scmp.ne.s32.totalorder %s2080_s28, %s2076_s27 }
  0x17   : > { %s2689_s21 = smov (%p48_p0, %s46_s21), 0  ;;  %p462_p5 = scmp.eq.s32.totalorder %s1560_s20, 1 }
  0x18   : > { %2653 = sst [smem:[#allocation25_spill]] %s2689_s21  ;;  %p2251_p4 = por %p456_p2, %p455_p1 }
  0x19   : > { %s440_s23 = ssub.s32 %s2092_s0, %s2689_s21  ;;  %p1561_p6 = scmp.ge.s32.totalorder %s2096_s19, 1 }
  0x1a   : > { %s2654_s2 = scalar_select %p2251_p4, 1, 0 }
  0x1b   : > { %p443_p7 = scmp.eq.s32.totalorder %s440_s23, 0  ;;  %p2258_p8 = por %p462_p5, %p461_p3 }
  0x1c   : > { %2655 = sst [smem:[#allocation26_spill]] %s2654_s2  ;;  %p469_p9 = scmp.lt.s32.totalorder %s2096_s19, 3 }
  0x1d   : > { %s2656_s24 = scalar_select %p2258_p8, 1, 0 }
  0x1e   : > { %s2264_s25 = scalar_select %p443_p7, %s2084_s29, %s445_s22  }
  0x1f   : > { %2657 = sst [smem:[#allocation27_spill]] %s2656_s24  ;;  %p2266_p10 = pnand %p1561_p6, %p469_p9 }
  0x20   : > { %2658 = sst [smem:[#allocation28_spill]] %s2264_s25  ;;  %p2270_p11 = scmp.eq.s32.totalorder %s1559_s1, 0 }
  0x21   : > { %s2659_s26 = scalar_select %p2266_p10, 1, 0 }
  0x22   : > { %s2660_s27 = scalar_select %p2270_p11, 1, 0 }
  0x23   : > { %p1736_p12 = pneg %p2266_p10  ;;  %s2102_s20 = smov [#allocation10]  }
  0x24   : > { %s510_s23 = sshll.u32 %s2102_s20, 4  ;;  %s2103_s22 = smov [#allocation13]   ;;  %s511_s23 = int_to_ptr.vmem [resolvable:$true] %s510_s23 }
  0x25   : > { %p2278_p13 = pnand %p2270_p11, %p1736_p12  ;;  %s534_s0 = sshll.u32 %s2103_s22, 4  ;;  %s2282_s0 = int_to_ptr.vmem [resolvable:$true] %s534_s0 }
  0x26   : > { %s2662_s6 = sld [smem:[#allocation32_spill]] }
  0x27   : > { %p2292_p1 = pneg %p2278_p13 }
  0x2c   : > { %s1862_s29 = scalar_lea.hbm %s2662_s6, 256 }
  0x2d   : > { %p1863_p0 = scmp.ne.s32.totalorder %s2662_s6, %s1862_s29  ;;  %p1869_p5 = scmp.lt.u32.totalorder %s1862_s29, %s2662_s6 }
  0x2f   : > { %p1865_p2 = pnand %p2292_p1, %p1863_p0 }
  0x31   : > { %p1866_p3 = pneg %p1865_p2 }
  0x33   : > { %p1871_p6 = pnand %p1869_p5, %p1866_p3 }
  0x35   : > { %1874 = shalt.err (!%p1871_p6)
}
  0x36   : > { %s1875_s25 = scalar_lea.vmem %s511_s23, 256  ;;  %p1883_p8 = scmp.lt.s32.totalorder %s511_s23, %s511_s23 }
  0x37   : > { %p1876_p7 = scmp.ne.s32.totalorder %s511_s23, %s1875_s25  ;;  %p1884_p4 = scmp.lt.s32.totalorder %s1875_s25, %s1875_s25 }
  0x39   : > { %p1878_p9 = pnand %p1876_p7, %p2292_p1  ;;  %p1885_p11 = por %p1884_p4, %p1883_p8 }
  0x3b   : > { %p1879_p12 = pneg %p1878_p9 }
  0x3d   : > { %p1886_p10 = pnand %p1885_p11, %p1879_p12 }
  0x3f   : > { %1889 = shalt.err (!%p1886_p10)
}
  0x40   : > { %s2104_s19 = smov 64   ;;  %s2105_s24 = smov 4  }
  0x41   : > { %1742 = dma.hbm_to_vmem [thread:$0]  (!%p2278_p13), %s2662_s6, 256, %s511_s23, [#allocation11], %s2104_s19, %s2104_s19, %s2105_s24  }
  0x42   : > { %s1890_s2 = scalar_lea.hbm %s2613_s8, 256 }
  0x43   : > { %p1891_p4 = scmp.ne.s32.totalorder %s2613_s8, %s1890_s2  ;;  %p1897_p11 = scmp.lt.u32.totalorder %s1890_s2, %s2613_s8 }
  0x45   : > { %p1893_p8 = pnand %p1891_p4, %p2292_p1 }
  0x47   : > { %p1894_p10 = pneg %p1893_p8 }
  0x49   : > { %p1899_p0 = pnand %p1897_p11, %p1894_p10 }
  0x4b   : > { %1902 = shalt.err (!%p1899_p0)
}
  0x4c   : > { %s1903_s23 = scalar_lea.vmem %s2282_s0, 256  ;;  %p1911_p6 = scmp.lt.s32.totalorder %s2282_s0, %s2282_s0 }
  0x4d   : > { %p1904_p2 = scmp.ne.s32.totalorder %s2282_s0, %s1903_s23  ;;  %p1912_p7 = scmp.lt.s32.totalorder %s1903_s23, %s1903_s23 }
  0x4f   : > { %p1906_p3 = pnand %p1904_p2, %p2292_p1  ;;  %p1913_p9 = por %p1912_p7, %p1911_p6 }
  0x51   : > { %p1907_p5 = pneg %p1906_p3 }
  0x53   : > { %p1914_p12 = pnand %p1913_p9, %p1907_p5 }
  0x55   : > { %1917 = shalt.err (!%p1914_p12)
}
  0x56   : > { %1748 = dma.hbm_to_vmem [thread:$0]  (!%p2278_p13), %s2613_s8, 256, %s2282_s0, [#allocation14], %s2104_s19, %s2104_s19, %s2105_s24  }
  0x57   : > { %s2106_s17 = smov [#allocation7]   ;;  %s2107_s18 = smov [#allocation12]  }
  0x58   : > { %s494_s2 = sshll.u32 %s2106_s17, 4  ;;  %s524_s29 = sshll.u32 %s2107_s18, 4  ;;  %s495_s2 = int_to_ptr.vmem [resolvable:$true] %s494_s2  ;;  %s525_s29 = int_to_ptr.vmem [resolvable:$true] %s524_s29 }
  0x59   : > { %s1918_s25 = scalar_lea.hbm %s2609_s4, 256 }
  0x5a   : > { %p1919_p4 = scmp.ne.s32.totalorder %s2609_s4, %s1918_s25  ;;  %p1925_p11 = scmp.lt.u32.totalorder %s1918_s25, %s2609_s4 }
  0x5c   : > { %p1921_p8 = pnand %p1919_p4, %p2292_p1 }
  0x5e   : > { %p1922_p10 = pneg %p1921_p8 }
  0x60   : > { %p1927_p0 = pnand %p1925_p11, %p1922_p10 }
  0x62   : > { %1930 = shalt.err (!%p1927_p0)
}
  0x63   : > { %s1931_s0 = scalar_lea.vmem %s495_s2, 256  ;;  %p1939_p6 = scmp.lt.s32.totalorder %s495_s2, %s495_s2 }
  0x64   : > { %p1932_p2 = scmp.ne.s32.totalorder %s495_s2, %s1931_s0  ;;  %p1940_p7 = scmp.lt.s32.totalorder %s1931_s0, %s1931_s0 }
  0x66   : > { %p1934_p3 = pnand %p1932_p2, %p2292_p1  ;;  %p1941_p9 = por %p1940_p7, %p1939_p6 }
  0x68   : > { %p1935_p5 = pneg %p1934_p3 }
  0x6a   : > { %p1942_p12 = pnand %p1941_p9, %p1935_p5 }
  0x6c   : > { %1945 = shalt.err (!%p1942_p12)
}
  0x6d   : > { %1739 = dma.hbm_to_vmem [thread:$0]  (!%p2278_p13), %s2609_s4, 256, %s495_s2, [#allocation8], %s2104_s19, %s2104_s19, %s2105_s24  }
  0x6e   : > { %s1946_s18 = scalar_lea.hbm %s2612_s7, 16 }
  0x6f   : > { %p1947_p4 = scmp.ne.s32.totalorder %s2612_s7, %s1946_s18  ;;  %p1953_p11 = scmp.lt.u32.totalorder %s1946_s18, %s2612_s7 }
  0x71   : > { %p1949_p8 = pnand %p1947_p4, %p2292_p1 }
  0x73   : > { %p1950_p10 = pneg %p1949_p8 }
  0x75   : > { %p1955_p0 = pnand %p1953_p11, %p1950_p10 }
  0x77   : > { %1958 = shalt.err (!%p1955_p0)
}
  0x78   : > { %s1959_s15 = scalar_lea.vmem %s525_s29, 16  ;;  %s1966_s19 = scalar_lea.vmem %s525_s29, 32 }
  0x79   : > { %p1960_p2 = scmp.ne.s32.totalorder %s525_s29, %s1959_s15  ;;  %p1967_p6 = scmp.lt.s32.totalorder %s525_s29, %s525_s29 }
  0x7a   : > { %p1968_p7 = scmp.lt.s32.totalorder %s1966_s19, %s1959_s15 }
  0x7b   : > { %p1962_p3 = pnand %p1960_p2, %p2292_p1 }
  0x7c   : > { %p1969_p9 = por %p1968_p7, %p1967_p6 }
  0x7d   : > { %p1963_p5 = pneg %p1962_p3 }
  0x7f   : > { %p1970_p12 = pnand %p1969_p9, %p1963_p5 }
  0x81   : > { %1973 = shalt.err (!%p1970_p12)
}
  0x82   : > { %1745 = dma.hbm_to_vmem [thread:$0]  (!%p2278_p13), %s2612_s7, 16, %s525_s29, [#allocation11]  }
  0x83   : > { %s2108_s0 = smov [#allocation15]   ;;  %s1974_s17 = scalar_lea.hbm %s2614_s9, 16 }
  0x84   : > { %s548_s6 = sshll.u32 %s2108_s0, 4  ;;  %p1975_p4 = scmp.ne.s32.totalorder %s2614_s9, %s1974_s17  ;;  %s549_s6 = int_to_ptr.vmem [resolvable:$true] %s548_s6 }
  0x85   : > { %p1981_p11 = scmp.lt.u32.totalorder %s1974_s17, %s2614_s9 }
  0x86   : > { %p1977_p8 = pnand %p1975_p4, %p2292_p1 }
  0x88   : > { %p1978_p10 = pneg %p1977_p8 }
  0x8a   : > { %p1983_p0 = pnand %p1981_p11, %p1978_p10 }
  0x8c   : > { %1986 = shalt.err (!%p1983_p0)
}
  0x8d   : > { %s1987_s29 = scalar_lea.vmem %s549_s6, 16  ;;  %s1994_s23 = scalar_lea.vmem %s549_s6, 32 }
  0x8e   : > { %p1988_p2 = scmp.ne.s32.totalorder %s549_s6, %s1987_s29  ;;  %p1995_p6 = scmp.lt.s32.totalorder %s549_s6, %s549_s6 }
  0x8f   : > { %p1996_p7 = scmp.lt.s32.totalorder %s1994_s23, %s1987_s29 }
  0x90   : > { %p1990_p3 = pnand %p1988_p2, %p2292_p1 }
  0x91   : > { %p1997_p9 = por %p1996_p7, %p1995_p6 }
  0x92   : > { %p1991_p5 = pneg %p1990_p3 }
  0x94   : > { %p1998_p12 = pnand %p1997_p9, %p1991_p5 }
  0x96   : > { %2001 = shalt.err (!%p1998_p12)
}
  0x97   : > { %1751 = dma.hbm_to_vmem [thread:$0]  (!%p2278_p13), %s2614_s9, 16, %s549_s6, [#allocation14]  }
  0x98   : > { %p2664_p4 = scmp.ne.s32.totalorder %s2659_s26, 0 }
  0x99   : > { %p2665_p8 = scmp.ne.s32.totalorder (!%p2664_p4), %s2660_s27, 0 }
  0x9a   : > { %596 = sbr.rel (%p2664_p4) target bundleno = 2719 (0xa9f), region = 92 }
  0xa1   : > { %2059 = dma.done.wait (%p2665_p8), [#allocation8], 256  }
  0xa2   : > { %2061 = vsyncadd (%p2665_p8), [#allocation8], 4294967040 }
  0xa3   : > { %2063 = dma.done.wait (%p2665_p8), [#allocation11], 272  }
  0xa4   : > { %2065 = vsyncadd (%p2665_p8), [#allocation11], 4294967024 }
  0xa5   : > { %2067 = dma.done.wait (%p2665_p8), [#allocation14], 272  }
  0xa6   : > { %2069 = vsyncadd (%p2665_p8), [#allocation14], 4294967024  ;;  %p673_p13 = scmp.lt.s32.totalorder %s2088_s30, 1  ;;  %s2666_s2 = sld [smem:[#allocation29_spill]]  ;;  %vm693_vm0 = vcmask 261120   ;;  %v1836_v12 = vld [vmem:[#allocation7] sm:$0xff]  }
  0xa7   : > { %s2667_s16 = sld [smem:[#allocation30_spill]]  ;;  %v1837_v13 = vld [vmem:[#allocation10] sm:$0xff]   ;;  %v2109_v14 = vmov 0.0   ;;  %v1838_v15 = vld [vmem:[#allocation7 + $0x8] sm:$0xff]   ;;  %v1839_v16 = vld [vmem:[#allocation10 + $0x8] sm:$0xff]   ;;  %s670_s27 = sand.u32 1, %s2080_s28  }
  0xa8   : > { %s674_s21 = scalar_select %p673_p13, %s2088_s30, 1  ;;  %1650 = vmatprep.subr.bf16.mxu0 %v2109_v14  ;;  %1658 = vmatprep.subr.bf16.mxu1 %v2109_v14  ;;  %vm2110_vm1 = vmmov 0   ;;  %v1624_v24 = vld [vmem:[%s2615_s10] ss:$0 sm:$0xff]  ;;  %v1582_v38 = vld [vmem:[#allocation12] ss:$0 sm:$0xff] }
  0xa9   : > { %1651 = vmatpush3.bf16.msra.mxu0 %v1836_v12  ;;  %1659 = vmatpush3.bf16.msra.mxu1 %v1837_v13  ;;  %s2433_s18 = sshll.u32 %s670_s27, 3  ;;  %v1625_v26 = vld [vmem:[%s2616_s11] ss:$0 sm:$0xff]  ;;  %s2668_s19 = sld [smem:[#allocation31_spill]]  ;;  %vm854_vm2 = vcmask 125952  }
  0xaa   : > { %s1575_s26 = sshll.u32 %s674_s21, 3  ;;  %1652 = vmatprep.subr.bf16.mxu0 %v2109_v14  ;;  %1660 = vmatprep.subr.bf16.mxu1 %v2109_v14  ;;  %v1578_v37 = vld [vmem:[%s2610_s5] ss:$0 sm:$0xff]  ;;  %s2471_s1 = smov 0  }
  0xab   : > { %1654 = vmatprep.mubr.msk.bf16.mxu0 %vm2110_vm1, %v2109_v14  ;;  %1662 = vmatprep.mubr.msk.bf16.mxu1 %vm2110_vm1, %v2109_v14  ;;  %v1588_v51 = vld [vmem:[%s2608_s3] ss:$0 sm:$0xff] }
  0xac   : > { %s676_s0 = scalar_lea.vmem %s2666_s2, %s1575_s26 }
  0xad   : > { %s2416_s17 = scalar_lea.vmem %s2667_s16, %s1575_s26  ;;  %v2418_v0 = vld [vmem:[%s676_s0] sm:$0xff]  ;;  %1653 = vmatpush3.bf16.msra.mxu0 %v1838_v15  ;;  %1661 = vmatpush3.bf16.msra.mxu1 %v1839_v16  ;;  %s2111_s0 = smov 112  }
  0xae   : > { %v694_v1 = vsel %vm693_vm0, %v2418_v0, 0.0  ;;  %1666 = vmatprep.subr.bf16.mxu0 %v2109_v14  ;;  %s672_s16 = scalar_lea.vmem [#allocation16], %s2433_s18 }
  0xaf   : > { %695 = vadd.xlane.f32.xlu0 %v694_v1  ;;  %s2669_s21 = smov %s2668_s19  ;;  %v1840_v31 = vld [vmem:[%s2668_s19] sm:$0xff]  }
  0xb0   : > { %v1841_v34 = vld [vmem:[%s2669_s21 + $0x8] sm:$0xff]  }
  0xb3   : > { %881 = vadd.xlane.f32.xlu0 %v694_v1 }
 0x13c   : > { %v696_v2 = vpop.xlane.xlu0 %695 }
 0x13d   : > { %v698_v3 = vmul.f32 0.03125, %v696_v2 }
 0x13f   : > { %v699_v4 = vsub.f32 %v2418_v0, %v698_v3 }
 0x140   : > { %v882_v5 = vpop.xlane.xlu0 %881 }
 0x141   : > { %v884_v6 = vmul.f32 0.03125, %v882_v5  ;;  %v700_v7 = vmul.f32 %v699_v4, %v699_v4 }
 0x143   : > { %v885_v8 = vsub.f32 %v2418_v0, %v884_v6  ;;  %v701_v9 = vsel %vm693_vm0, %v700_v7, 0.0 }
 0x144   : > { %702 = vadd.xlane.f32.xlu1 %v701_v9 }
 0x145   : > { %v886_v10 = vmul.f32 %v885_v8, %v885_v8 }
 0x147   : > { %v887_v11 = vsel %vm693_vm0, %v886_v10, 0.0 }
 0x148   : > { %888 = vadd.xlane.f32.xlu1 %v887_v11 }
 0x1d1   : > { %v703_v17 = vpop.xlane.xlu1 %702 }
 0x1d2   : > { %v704_v18 = vmul.f32 0.03125, %v703_v17 }
 0x1d4   : > { %v705_v19 = vadd.f32 1e-05, %v704_v18 }
 0x1d5   : > { %v889_v20 = vpop.xlane.xlu1 %888 }
 0x1d6   : > { %1842 = vrsqrt.f32 %v705_v19  ;;  %v890_v21 = vmul.f32 0.03125, %v889_v20 }
 0x1d8   : > { %v891_v22 = vadd.f32 1e-05, %v890_v21 }
 0x1da   : > { %1844 = vrsqrt.f32 %v891_v22 }
 0x1e0   : > { %v1843_v23 = vpop.eup %1842 }
 0x1e1   : > { %v707_v25 = vmul.f32 %v1843_v23, %v699_v4 }
 0x1e3   : > { %v714_v27 = vmul.f32 %v1624_v24, %v707_v25 }
 0x1e4   : > { %v1845_v28 = vpop.eup %1844 }
 0x1e5   : > { %v893_v29 = vmul.f32 %v1845_v28, %v885_v8  ;;  %v721_v30 = vadd.f32 %v1625_v26, %v714_v27 }
 0x1e7   : > { %v722_v32 = vpack.c.bf16 %v721_v30, %v721_v30  ;;  %v900_v33 = vmul.f32 %v1624_v24, %v893_v29 }
 0x1e9   : > { %1655 = vmatmul.mubr.msk.bf16.vlgmr.msra.gmra.mrb[0].mxu0 %vm693_vm0, %v722_v32  ;;  %1663 = vmatmul.mubr.msk.bf16.vlgmr.msra.gmra.mrb[0].mxu1 %vm693_vm0, %v722_v32  ;;  %v907_v35 = vadd.f32 %v1625_v26, %v900_v33 }
 0x1ea   : > { %1667 = vmatpush3.bf16.msra.mxu0 %v1840_v31  ;;  %1670 = vmatprep.mubr.msk.bf16.mxu0 %vm2110_vm1, %v2109_v14 }
 0x1eb   : > { %1668 = vmatprep.subr.bf16.mxu0 %v2109_v14  ;;  %v908_v36 = vpack.c.bf16 %v907_v35, %v907_v35 }
 0x1ee   : > { %1669 = vmatpush3.bf16.msra.mxu0 %v1841_v34 }
 0x1f1   : > { %1671 = vmatmul.mubr.msk.bf16.vlgmr.msra.gmra.mrb[4].mxu0 %vm693_vm0, %v908_v36 }
 0x2bc   : > { %v783_v39 = vpop.f32.mrb[0].mxu0  ;;  %v847_v40 = vpop.f32.mrb[0].mxu1 }
 0x2bd   : > { %v784_v41 = vadd.f32 %v1578_v37, %v783_v39  ;;  %v848_v42 = vadd.f32 %v1582_v38, %v847_v40  ;;  %v1656_v43 = vpop.f32.mrb[1].mxu0  ;;  %v1664_v44 = vpop.f32.mrb[1].mxu1 }
 0x2be   : > { %v786_v45 = vpop.f32.mrb[2].mxu0  ;;  %v850_v46 = vpop.f32.mrb[2].mxu1 }
 0x2bf   : > { %v789_v47 = vpack.c.bf16 %v784_v41, %v784_v41  ;;  %v853_v48 = vpack.c.bf16 %v848_v42, %v848_v42  ;;  %v1657_v49 = vpop.f32.mrb[3].mxu0  ;;  %v1665_v50 = vpop.f32.mrb[3].mxu1 }
 0x2c1   : > { %855 = vst.msk [vmem:[#allocation3] sm:$0xf] %vm854_vm2, %v789_v47  ;;  %856 = vst.msk [vmem:[#allocation4] sm:$0xf] %vm854_vm2, %v853_v48  ;;  %870 = vrot.lane.b32.xlu1 %v853_v48, %s2111_s0  ;;  %860 = vrot.lane.b32.xlu0 %v789_v47, %s2111_s0 }
 0x2c4   : > { %v969_v52 = vpop.f32.mrb[4].mxu0 }
 0x2c5   : > { %v970_v53 = vadd.f32 %v1588_v51, %v969_v52  ;;  %v1672_v54 = vpop.f32.mrb[5].mxu0 }
 0x2c6   : > { %v972_v55 = vpop.f32.mrb[6].mxu0 }
 0x2c7   : > { %v975_v56 = vmul.f32 0.25, %v970_v53  ;;  %v1673_v57 = vpop.f32.mrb[7].mxu0 }
 0x2c9   : > { %v976_v58 = vpack.c.bf16 %v975_v56, %v975_v56 }
 0x2cb   : > { %978 = vst.msk [vmem:[#allocation2] sm:$0xf] %vm854_vm2, %v976_v58  ;;  %982 = vrot.lane.b32.xlu1 %v976_v58, %s2111_s0 }
 0x333   : > { %v871_v59 = vpop.permute.xlu1 %870  ;;  %v861_v60 = vpop.permute.xlu0 %860 }
 0x334   : > { %875 = vst.msk [vmem:[#allocation4 + $0x4] sm:$0xf] %vm854_vm2, %v871_v59  ;;  %866 = vst.msk [vmem:[#allocation3 + $0x4] sm:$0xf] %vm854_vm2, %v861_v60 }
 0x33d   : > { %v983_v61 = vpop.permute.xlu1 %982 }
 0x33e   : > { %986 = vst.msk [vmem:[#allocation2 + $0x4] sm:$0xf] %vm854_vm2, %v983_v61 }
 0x33f LB: >> { %v2112_v62 = vmov 0.0   ;;  %vm2113_vm3 = vmmov 0   ;;  %s2477_s22 = sshll.u32 %s2100_s1, 2  ;;  %vm1003_vm4 = vcmask 130048   ;;  %vm1050_vm5 = vcmask 64512   ;;  %s992_s1 = sadd.s32 1, %s2100_s1   ;;  %s2100_s1 = sphi %s2471_s1, %s992_s1  }
 0x340   : >> { %1674 = vmatprep.subr.bf16.mxu0 %v2112_v62  ;;  %1676 = vmatprep.mubr.msk.bf16.mxu0 %vm2113_vm3, %v2112_v62  ;;  %s997_s25 = scalar_lea.vmem [#allocation3], %s2477_s22  ;;  %s994_s29 = scalar_lea.vmem [#allocation2], %s2477_s22  ;;  %vm1069_vm6 = vcmask 1043456  }
 0x341   : >> { %1680 = vmatprep.subr.bf16.mxu1 %v2112_v62  ;;  %1682 = vmatprep.mubr.msk.bf16.mxu1 %vm2113_vm3, %v2112_v62  ;;  %v998_v63 = vld [vmem:[%s997_s25] sm:$0xf]  ;;  %s1000_s23 = scalar_lea.vmem %s2416_s17, %s2477_s22  ;;  %s1064_s15 = scalar_lea.vmem [#allocation4], %s2477_s22 }
 0x342   : >> { %v1008_v1 = vsel %vm1003_vm4, %v998_v63, 0  ;;  %v1001_v3 = vld [vmem:[%s1000_s23] sm:$0xf]  ;;  %s1115_s19 = scalar_lea.vmem [#allocation5], %s2477_s22  ;;  %p989_p1 = scmp.ge.s32.totalorder %s992_s1, 2  }
 0x343   : >> { %1675 = vmatpush3.bf16.xpose.msra.mxu0 %v1008_v1  ;;  %v1002_v4 = vunpack.c.l.bf16 %v1001_v3  ;;  %v1065_v17 = vld [vmem:[%s1064_s15] sm:$0xf]  ;;  %s2114_s26 = smov (%p989_p1), 16   ;;  %v1850_v30 = vld [vmem:[#allocation13] sm:$0xff] (%p989_p1)   ;;  %v1851_v31 = vld [vmem:[#allocation13 + $0x8] sm:$0xff] (%p989_p1)   ;;  %vm1125_vm7 = vcmask (%p989_p1), 257152  }
 0x344   : >> { %v1071_v18 = vsel %vm1069_vm6, %v1065_v17, 0  ;;  %1702 = vmatprep.subr.bf16.mxu0 (%p989_p1), %v2109_v14  ;;  %v1600_v34 = vld [vmem:[#allocation15] ss:$0 sm:$0xff] (%p989_p1)  ;;  %v1852_v47 = vld [vmem:[%s2619_s14] sm:$0xff] (%p989_p1)   ;;  %s2670_s22 = sld [smem:[#allocation33_spill]] (%p989_p1)  ;;  %s2671_s23 = sld [smem:[#allocation35_spill]] (%p989_p1) }
 0x345   : >> { %v995_v2 = vld [vmem:[%s994_s29] sm:$0xf]  ;;  %1681 = vmatpush3.bf16.msra.mxu1 %v1071_v18  ;;  %s2672_s6 = sld [smem:[#allocation34_spill]] (%p989_p1)  ;;  %vm1340_vm8 = vcmask (%p989_p1), 523264   ;;  %s2674_s25 = sld [smem:[#allocation26_spill]] (%p989_p1) }
 0x346   : > { %1686 = vmatprep.subr.bf16.mxu1 (%p989_p1), %v2109_v14  ;;  %v1604_v52 = vld [vmem:[%s2617_s12] ss:$0 sm:$0xff] (%p989_p1)  ;;  %s1617_s29 = sshll.u32 (%p989_p1), %s2088_s30, 7  ;;  %s1401_s15 = sshll.u32 (%p989_p1), %s672_s16, 4  ;;  %s2555_s15 = int_to_ptr.vmem [resolvable:$true] %s1401_s15 }
 0x347   : > { %s2675_s17 = sld [smem:[#allocation37_spill]] (%p989_p1)  ;;  %s1387_s30 = scalar_lea.sflag (%p989_p1), [#allocation9], %s670_s27 }
 0x348   : > { %s2002_s24 = scalar_lea.vmem (%p989_p1), %s2555_s15, 128  ;;  %s2115_s2 = smov (%p989_p1), [#allocation16]  }
 0x349   : > { %p2003_p10 = scmp.ne.s32.totalorder (%p989_p1), %s2555_s15, %s2002_s24  ;;  %s2006_s0 = sshll.u32 (%p989_p1), %s2115_s2, 4  ;;  %s2007_s0 = int_to_ptr.vmem [resolvable:$false] %s2006_s0 }
 0x34a   : >> { %1677 = vmatmul.mubr.msk.bf16.vlgmr.msra.gmra.mrb[0].mxu0 %vm1003_vm4, %v995_v2  ;;  %v1605_v54 = vld [vmem:[%s2670_s22] ss:$0 sm:$0xff] (%p989_p1)  ;;  %v1855_v59 = vld [vmem:[%s2671_s23 + $0x8] sm:$0xff] (%p989_p1)   ;;  %v1856_v60 = vld [vmem:[%s2671_s23 + $0x10] sm:$0xff] (%p989_p1)   ;;  %s2673_s22 = sld [smem:[#allocation36_spill]] (%p989_p1)  ;;  %p2009_p3 = scmp.lt.s32.totalorder (%p989_p1), %s2555_s15, %s2007_s0 }
 0x34b   : > { %1710 = vmatprep.mubr.msk.bf16.mxu0 (%p989_p1), %vm2110_vm1, %v2109_v14  ;;  %v1854_v58 = vld [vmem:[%s2671_s23] sm:$0xff] (%p989_p1)   ;;  %v1857_v61 = vld [vmem:[%s2671_s23 + $0x18] sm:$0xff] (%p989_p1)   ;;  %p2676_p11 = scmp.ne.s32.totalorder (%p989_p1), %s2674_s25, 0 }
 0x34c   : > { %1703 = vmatpush3.bf16.msra.mxu0 (%p989_p1), %v1854_v58  ;;  %v1606_v62 = vld [vmem:[%s2672_s6] ss:$0 sm:$0xff] (%p989_p1)  ;;  %s2008_s6 = scalar_lea.vmem (%p989_p1), %s2007_s0, 256 }
 0x34d   : > { %1704 = vmatprep.subr.bf16.mxu0 (%p989_p1), %v2109_v14  ;;  %s2553_s20 = scalar_lea.hbm (%p989_p1), %s2675_s17, %s1617_s29  ;;  %p2004_p0 = pnand (%p989_p1), %p2003_p10, %p2676_p11 }
 0x34e   : > { %p2010_p5 = scmp.lt.s32.totalorder (%p989_p1), %s2008_s6, %s2002_s24 }
 0x34f   : > { %p2005_p2 = pneg (%p989_p1), %p2004_p0 }
 0x350   : > { %1705 = vmatpush3.bf16.msra.mxu0 (%p989_p1), %v1855_v59  ;;  %p2011_p6 = por (%p989_p1), %p2010_p5, %p2009_p3 }
 0x351   : > { %1706 = vmatprep.subr.bf16.mxu0 (%p989_p1), %v2109_v14 }
 0x352   : > { %p2012_p7 = pnand (%p989_p1), %p2011_p6, %p2005_p2 }
 0x354   : > { %1707 = vmatpush3.bf16.msra.mxu0 (%p989_p1), %v1856_v60 }
 0x355   : > { %1708 = vmatprep.subr.bf16.mxu0 (%p989_p1), %v2109_v14 }
 0x358   : > { %1709 = vmatpush3.bf16.msra.mxu0 (%p989_p1), %v1857_v61 }
 0x41d   : >> { %v1044_v5 = vpop.f32.mrb[0].mxu0 }
 0x41e   : >> { %v1045_v6 = vadd.f32 %v1044_v5, %v1002_v4  ;;  %v1678_v7 = vpop.f32.mrb[1].mxu0 }
 0x41f   : >> { %v1047_v8 = vpop.f32.mrb[2].mxu0 }
 0x420   : >> { %v1679_v9 = vpop.f32.mrb[3].mxu0  ;;  %v1051_v10 = vsel %vm1050_vm5, %v1045_v6, -inf }
 0x421   : >> { %1052 = vmax.xlane.f32.xlu0 %v1051_v10 }
 0x4ae   : >> { %v1053_v11 = vpop.xlane.xlu0 %1052 }
 0x4af   : >> { %v1054_v12 = vsub.f32 %v1045_v6, %v1053_v11 }
 0x4b1   : >> { %v1055_v13 = vmul.f32 1.442695, %v1054_v12 }
 0x4b3   : >> { %1846 = vpow2.f32 %v1055_v13 }
 0x4bd   : >> { %v1847_v15 = vpop.eup %1846 }
 0x4be   : >> { %v1057_v16 = vsel %vm1050_vm5, %v1847_v15, 0.0 }
 0x4bf   : >> { %1058 = vadd.xlane.f32.xlu0 %v1057_v16 }
 0x54c   : >> { %v1059_v19 = vpop.xlane.xlu0 %1058 }
 0x54d   : >> { %1848 = vrcp.f32 %v1059_v19 }
 0x557   : >> { %v1849_v20 = vpop.eup %1848 }
 0x558   : >> { %v1061_v21 = vmul.f32 %v1849_v20, %v1847_v15  ;;  %v1610_v15 = vld [vmem:[%s2673_s22] ss:$0 sm:$0xff] (%p989_p1) }
 0x55a   : >> { %v1062_v22 = vpack.c.bf16 %v1061_v21, %v1061_v21 }
 0x55c   : >> { %1683 = vmatmul.mubr.msk.bf16.vlgmr.msra.gmra.mrb[0].mxu1 %vm1050_vm5, %v1062_v22 }
 0x55d   : > { %1690 = vmatprep.mubr.msk.bf16.mxu1 (%p989_p1), %vm2110_vm1, %v2109_v14  ;;  %1687 = vmatpush3.bf16.msra.mxu1 (%p989_p1), %v1850_v30 }
 0x55e   : > { %1688 = vmatprep.subr.bf16.mxu1 (%p989_p1), %v2109_v14 }
 0x561   : > { %1689 = vmatpush3.bf16.msra.mxu1 (%p989_p1), %v1851_v31 }
 0x562   : > { %1694 = vmatprep.subr.bf16.mxu1 (%p989_p1), %v2109_v14 }
 0x62c   : > { %991 = sbr.rel (!%p989_p1) target bundleno = 831 (0x33f), region = 172 }
 0x62f   : >> { %v1107_v23 = vpop.f32.mrb[0].mxu1 }
 0x630   : >> { %v1113_v24 = vpack.c.bf16 %v1107_v23, %v1107_v23  ;;  %v1684_v25 = vpop.f32.mrb[1].mxu1 }
 0x631   : >> { %v1110_v26 = vpop.f32.mrb[2].mxu1 }
 0x632   : >> { %1116 = vst.msk [vmem:[%s1115_s19] sm:$0xf] %vm854_vm2, %v1113_v24  ;;  %v1685_v27 = vpop.f32.mrb[3].mxu1 }
 0x639   : > { %v1120_v28 = vld [vmem:[#allocation5 + $0x4] sm:$0xf]  ;;  %v1117_v29 = vld [vmem:[#allocation5] sm:$0xf] }
 0x63a   : > { %1122 = vrot.lane.b32.xlu0 %v1120_v28, %s2114_s26  ;;  %1118 = vst.msk [vmem:[#allocation6] sm:$0xf] %vm854_vm2, %v1117_v29 }
 0x6ac   : > { %v1123_v32 = vpop.permute.xlu0 %1122 }
 0x6ad   : > { %1126 = vst.msk [vmem:[#allocation6] sm:$0xf] %vm1125_vm7, %v1123_v32 }
 0x6b4   : > { %v1127_v33 = vld [vmem:[#allocation6] sm:$0xf] }
 0x6b5   : > { %1691 = vmatmul.mubr.msk.bf16.vlgmr.msra.gmra.mrb[0].mxu1 %vm693_vm0, %v1127_v33 }
 0x6b6   : > { %1698 = vmatprep.mubr.msk.bf16.mxu1 %vm2110_vm1, %v2109_v14  ;;  %1695 = vmatpush3.bf16.msra.mxu1 %v1852_v47 }
 0x6b7   : > { %1696 = vmatprep.subr.bf16.mxu1 %v2109_v14 }
 0x788   : > { %v1188_v35 = vpop.f32.mrb[0].mxu1 }
 0x789   : > { %v1189_v36 = vadd.f32 %v1600_v34, %v1188_v35  ;;  %v1692_v37 = vpop.f32.mrb[1].mxu1 }
 0x78a   : > { %v1191_v38 = vpop.f32.mrb[2].mxu1 }
 0x78b   : > { %v2505_v39 = vadd.f32 %v1189_v36, %v2418_v0  ;;  %v1693_v40 = vpop.f32.mrb[3].mxu1  ;;  %v1853_v0 = vld [vmem:[%s2619_s14 + $0x8] sm:$0xff]  }
 0x78c   : > { %1697 = vmatpush3.bf16.msra.mxu1 %v1853_v0 }
 0x78d   : > { %v1197_v41 = vsel %vm693_vm0, %v2505_v39, 0.0 }
 0x78e   : > { %1198 = vadd.xlane.f32.xlu0 %v1197_v41 }
 0x81b   : > { %v1199_v42 = vpop.xlane.xlu0 %1198 }
 0x81c   : > { %v1200_v43 = vmul.f32 0.03125, %v1199_v42 }
 0x81e   : > { %v1201_v44 = vsub.f32 %v2505_v39, %v1200_v43 }
 0x820   : > { %v1202_v45 = vmul.f32 %v1201_v44, %v1201_v44 }
 0x822   : > { %v1203_v46 = vsel %vm693_vm0, %v1202_v45, 0.0 }
 0x823   : > { %1204 = vadd.xlane.f32.xlu1 %v1203_v46 }
 0x8b0   : > { %v1205_v48 = vpop.xlane.xlu1 %1204 }
 0x8b1   : > { %v1206_v49 = vmul.f32 0.03125, %v1205_v48 }
 0x8b3   : > { %v1207_v50 = vadd.f32 1e-05, %v1206_v49 }
 0x8b5   : > { %1858 = vrsqrt.f32 %v1207_v50 }
 0x8bf   : > { %v1859_v51 = vpop.eup %1858 }
 0x8c0   : > { %v1209_v53 = vmul.f32 %v1859_v51, %v1201_v44 }
 0x8c2   : > { %v1216_v55 = vmul.f32 %v1604_v52, %v1209_v53 }
 0x8c4   : > { %v1223_v56 = vadd.f32 %v1605_v54, %v1216_v55 }
 0x8c6   : > { %v1224_v57 = vpack.c.bf16 %v1223_v56, %v1223_v56 }
 0x8c8   : > { %1699 = vmatmul.mubr.msk.bf16.vlgmr.msra.gmra.mrb[4].mxu1 %vm693_vm0, %v1224_v57 }
 0x99b   : > { %v1285_v63 = vpop.f32.mrb[4].mxu1 }
 0x99c   : > { %v1286_v1 = vadd.f32 %v1606_v62, %v1285_v63  ;;  %v1700_v2 = vpop.f32.mrb[5].mxu1 }
 0x99d   : > { %v1288_v3 = vpop.f32.mrb[6].mxu1 }
 0x99e   : > { %v1292_v4 = vmul.f32 0.044715, %v1286_v1  ;;  %v1701_v5 = vpop.f32.mrb[7].mxu1  ;;  %v1291_v14 = vmul.f32 0.5, %v1286_v1 }
 0x9a0   : > { %v1293_v6 = vmul.f32 %v1292_v4, %v1286_v1 }
 0x9a2   : > { %v1294_v7 = vmul.f32 %v1293_v6, %v1286_v1 }
 0x9a4   : > { %v1295_v8 = vadd.f32 %v1294_v7, %v1286_v1 }
 0x9a6   : > { %v1296_v9 = vmul.f32 0.7978846, %v1295_v8 }
 0x9a8   : > { %1860 = vtanh.f32 %v1296_v9 }
 0x9b2   : > { %v1861_v10 = vpop.eup %1860 }
 0x9b3   : > { %v1298_v11 = vadd.f32 1.0, %v1861_v10 }
 0x9b5   : > { %v1299_v12 = vmul.f32 %v1298_v11, %v1291_v14 }
 0x9b7   : > { %v1300_v13 = vpack.c.bf16 %v1299_v12, %v1299_v12 }
 0x9b9   : > { %1711 = vmatmul.mubr.msk.bf16.vlgmr.msra.gmra.mrb[0].mxu0 %vm1340_vm8, %v1300_v13 }
 0xa8c   : > { %v1378_v16 = vpop.f32.mrb[0].mxu0 }
 0xa8d   : > { %v1379_v17 = vadd.f32 %v1610_v15, %v1378_v16  ;;  %v1712_v18 = vpop.f32.mrb[1].mxu0 }
 0xa8e   : > { %v1381_v19 = vpop.f32.mrb[2].mxu0 }
 0xa8f   : > { %v1384_v20 = vadd.f32 %v1379_v17, %v2505_v39  ;;  %v1713_v21 = vpop.f32.mrb[3].mxu0 }
 0xa91   : > { %1385 = vst.msk [vmem:[%s672_s16] sm:$0xff] %vm693_vm0, %v1384_v20 }
 0xa92   : > { %2015 = shalt.err (!%p2012_p7)
}
 0xa93   : > { %s2016_s27 = scalar_lea.hbm %s2553_s20, 128  ;;  %s2020_s13 = scalar_lea.hbm %s2675_s17, 256 }
 0xa94   : > { %p2017_p9 = scmp.ne.s32.totalorder %s2553_s20, %s2016_s27  ;;  %p2021_p8 = scmp.lt.u32.totalorder %s2553_s20, %s2675_s17 }
 0xa95   : > { %p2022_p13 = scmp.lt.u32.totalorder %s2020_s13, %s2016_s27  ;;  %p2024_p10 = scmp.lt.u32.totalorder %s2016_s27, %s2553_s20 }
 0xa96   : > { %p2018_p12 = pnand %p2017_p9, %p2676_p11 }
 0xa97   : > { %p2023_p1 = por %p2022_p13, %p2021_p8 }
 0xa98   : > { %p2019_p4 = pneg %p2018_p12 }
 0xa99   : > { %p2025_p0 = por %p2024_p10, %p2023_p1 }
 0xa9b   : > { %p2026_p2 = pnand %p2025_p0, %p2019_p4 }
 0xa9d   : > { %2029 = shalt.err (!%p2026_p2)
}
 0xa9e   : > { %1734 = dma.vmem_to_hbm [thread:$0]  (%p2676_p11), %s2555_s15, 128, %s2553_s20, %s1387_s30  }
 0xa9f PF: > { %s2677_s29 = sld [smem:[#allocation24_spill]]  ;;  %s2678_s19 = sld [smem:[#allocation21_spill]] }
 0xaa0   : > { %s2679_s26 = sld [smem:[#allocation27_spill]] }
 0xaa5   : > { %p1766_p3 = scmp.ge.s32.totalorder %s2677_s29, 2  ;;  %s1413_s24 = sand.u32 1, %s2678_s19  }
 0xaa6   : > { %p2680_p5 = scmp.ne.s32.totalorder %s2679_s26, 0  ;;  %s1414_s2 = scalar_lea.sflag [#allocation9], %s1413_s24 }
 0xaa8   : > { %p1753_p6 = pnand %p1766_p3, %p2680_p5 }
 0xaaa   : > { %2071 = dma.done.wait (!%p1753_p6), %s1414_s2, 128  }
 0xaab   : > { %2073 = vsyncadd (!%p1753_p6), %s1414_s2, 4294967168  ;;  %s34_s19 = sadd.s32 1, %s2677_s29   ;;  %s2681_s0 = sld [smem:[#allocation22_spill]] }
 0xaac   : > { %p31_p7 = scmp.ge.s32.totalorder %s34_s19, 4   ;;  %s2682_s29 = sld [smem:[#allocation28_spill]] }
 0xaad   : > { %s2683_s30 = sld [smem:[#allocation23_spill]]  ;;  %s2684_s25 = sld [smem:[#allocation25_spill]] }
 0xaae   : > { %s2685_s27 = smov %s2080_s28  ;;  %33 = sbr.rel (!%p31_p7) target bundleno = 17 (0x11), region = 183 }
 0xab1   : > { %s2686_s28 = smov %s2681_s0 }
 0xab3   : > { %s2687_s0 = smov %s2684_s25 }
 0xab5   :  { %1419 = vsyncpa [#allocation8], 1 }
 0xab6   :  { %1421 = vsyncpa [#allocation8 + $0x1], 1 }
 0xab7   :  { %1422 = vsyncpa [#allocation11], 1 }
 0xab8   :  { %1423 = vsyncpa [#allocation14], 1 }
 0xab9   :  { %1424 = vsyncpa [#allocation9], 1 }
 0xaba   :  { %1426 = vsyncpa [#allocation9 + $0x1], 1 }

// kernel: tpu_custom_call.1
= control target key start
LH: loop header
LB: loop body
LE: loop exit
PB: predicated region body
PF: predicated region fallthrough
CT: control target
= control target key end

     0   :  { %s2602_s0 = inlined_call_operand.vmem [shape: f32[2,8,32], index: 0, kind: input, shape index: {}]   ;;  %s2603_s1 = inlined_call_operand.vmem [shape: bf16[2,2,8,8], index: 1, kind: input, shape index: {}]   ;;  %s2604_s2 = inlined_call_operand.vmem [shape: bf16[32,32], index: 2, kind: input, shape index: {}]   ;;  %s2605_s3 = inlined_call_operand.vmem [shape: f32[1,32], index: 3, kind: input, shape index: {}]   ;;  %s2606_s4 = inlined_call_operand.hbm [shape: bf16[32,32], index: 4, kind: input, shape index: {}]   ;;  %s2607_s5 = inlined_call_operand.vmem [shape: f32[1,32], index: 5, kind: input, shape index: {}]   ;;  %s2608_s6 = inlined_call_operand.hbm [shape: bf16[32,32], index: 6, kind: input, shape index: {}]   ;;  %s2609_s7 = inlined_call_operand.hbm [shape: f32[1,32], index: 7, kind: input, shape index: {}]   ;;  %s2610_s8 = inlined_call_operand.hbm [shape: bf16[32,32], index: 8, kind: input, shape index: {}]   ;;  %s2611_s9 = inlined_call_operand.hbm [shape: f32[1,32], index: 9, kind: input, shape index: {}]   ;;  %s2612_s10 = inlined_call_operand.vmem [shape: f32[1,32], index: 10, kind: input, shape index: {}]   ;;  %s2613_s11 = inlined_call_operand.vmem [shape: f32[1,32], index: 11, kind: input, shape index: {}]   ;;  %s2614_s12 = inlined_call_operand.vmem [shape: f32[1,32], index: 12, kind: input, shape index: {}]   ;;  %s2615_s13 = inlined_call_operand.vmem [shape: f32[1,32], index: 13, kind: input, shape index: {}]   ;;  %s2616_s14 = inlined_call_operand.vmem [shape: bf16[32,64], index: 14, kind: input, shape index: {}]   ;;  %s2617_s15 = inlined_call_operand.vmem [shape: f32[1,64], index: 15, kind: input, shape index: {}]   ;;  %s2618_s16 = inlined_call_operand.vmem [shape: bf16[64,32], index: 16, kind: input, shape index: {}]   ;;  %s2619_s17 = inlined_call_operand.vmem [shape: f32[1,32], index: 17, kind: input, shape index: {}]   ;;  %s2620_s18 = inlined_call_operand.hbm [shape: f32[2,8,32], index: 18, kind: output, shape index: {}]  }
   0x1   :  { %2637 = sst [smem:[#allocation29_spill]] %s2602_s0 }
   0x2   :  { %2638 = sst [smem:[#allocation30_spill]] %s2603_s1 }
   0x3   :  { %2639 = sst [smem:[#allocation31_spill]] %s2604_s2 }
   0x4   :  { %2640 = sst [smem:[#allocation32_spill]] %s2608_s6 }
   0x5   :  { %2641 = sst [smem:[#allocation33_spill]] %s2615_s13 }
   0x6   :  { %2642 = sst [smem:[#allocation34_spill]] %s2617_s15 }
   0x7   :  { %2643 = sst [smem:[#allocation35_spill]] %s2618_s16 }
   0x8   :  { %2644 = sst [smem:[#allocation36_spill]] %s2619_s17 }
   0x9   :  { %2645 = sst [smem:[#allocation37_spill]] %s2620_s18 }
   0xa   :  { %23 = vsyncpa [#allocation8], 0 }
   0xb   :  { %24 = vsyncpa [#allocation11], 0 }
   0xc   :  { %25 = vsyncpa [#allocation14], 0 }
   0xd   :  { %26 = vsyncpa [#allocation9], 0 }
   0xe   :  { %28 = vsyncpa [#allocation9 + $0x1], 0  ;;  %s2208_s27 = smov 0   ;;  %s2210_s28 = smov 0  }
   0xf   :  { %s2212_s29 = smov 0   ;;  %s2214_s30 = smov 0  }
  0x10   :  { %s2216_s0 = smov 0   ;;  %s2218_s19 = smov 0  }
  0x11 LB: > { %2646 = sst [smem:[#allocation21_spill]] %s2073_s27  ;;  %s1556_s1 = sadd.s32 4294967295, %s2093_s19   ;;  %s2093_s19 = sphi %s2218_s19, %s34_s19   ;;  %s2089_s0 = sphi %s2216_s0, %s2684_s0   ;;  %s2085_s30 = sphi %s2214_s30, %s2680_s30   ;;  %s2081_s29 = sphi %s2212_s29, %s2679_s29   ;;  %s2077_s28 = sphi %s2210_s28, %s2683_s28   ;;  %s2073_s27 = sphi %s2208_s27, %s2682_s27  }
  0x12   : > { %2647 = sst [smem:[#allocation22_spill]] %s2081_s29  ;;  %s1557_s20 = sadd.s32 4294967294, %s2093_s19  }
  0x13   : > { %2648 = sst [smem:[#allocation23_spill]] %s2089_s0  ;;  %s46_s21 = sadd.s32 1, %s2089_s0 }
  0x14   : > { %2649 = sst [smem:[#allocation24_spill]] %s2093_s19  ;;  %s445_s22 = sadd.s32 1, %s2081_s29 }
  0x15   : > { %p48_p0 = scmp.ge.s32.totalorder %s46_s21, 2  ;;  %p455_p1 = scmp.ne.s32.totalorder %s2081_s29, %s2077_s28 }
  0x16   : > { %p456_p2 = scmp.eq.s32.totalorder %s1556_s1, 1  ;;  %p461_p3 = scmp.ne.s32.totalorder %s2077_s28, %s2073_s27 }
  0x17   : > { %s2686_s21 = smov (%p48_p0, %s46_s21), 0  ;;  %p462_p5 = scmp.eq.s32.totalorder %s1557_s20, 1 }
  0x18   : > { %2650 = sst [smem:[#allocation25_spill]] %s2686_s21  ;;  %p2248_p4 = por %p456_p2, %p455_p1 }
  0x19   : > { %s440_s23 = ssub.s32 %s2089_s0, %s2686_s21  ;;  %p1558_p6 = scmp.ge.s32.totalorder %s2093_s19, 1 }
  0x1a   : > { %s2651_s2 = scalar_select %p2248_p4, 1, 0 }
  0x1b   : > { %p443_p7 = scmp.eq.s32.totalorder %s440_s23, 0  ;;  %p2255_p8 = por %p462_p5, %p461_p3 }
  0x1c   : > { %2652 = sst [smem:[#allocation26_spill]] %s2651_s2  ;;  %p469_p9 = scmp.lt.s32.totalorder %s2093_s19, 3 }
  0x1d   : > { %s2653_s24 = scalar_select %p2255_p8, 1, 0 }
  0x1e   : > { %s2261_s25 = scalar_select %p443_p7, %s2081_s29, %s445_s22  }
  0x1f   : > { %2654 = sst [smem:[#allocation27_spill]] %s2653_s24  ;;  %p2263_p10 = pnand %p1558_p6, %p469_p9 }
  0x20   : > { %2655 = sst [smem:[#allocation28_spill]] %s2261_s25  ;;  %p2267_p11 = scmp.eq.s32.totalorder %s1556_s1, 0 }
  0x21   : > { %s2656_s26 = scalar_select %p2263_p10, 1, 0 }
  0x22   : > { %s2657_s27 = scalar_select %p2267_p11, 1, 0 }
  0x23   : > { %p1733_p12 = pneg %p2263_p10  ;;  %s2099_s20 = smov [#allocation10]  }
  0x24   : > { %s503_s23 = sshll.u32 %s2099_s20, 4  ;;  %s2100_s22 = smov [#allocation13]   ;;  %s504_s23 = int_to_ptr.vmem [resolvable:$true] %s503_s23 }
  0x25   : > { %p2275_p13 = pnand %p2267_p11, %p1733_p12  ;;  %s527_s0 = sshll.u32 %s2100_s22, 4  ;;  %s2279_s0 = int_to_ptr.vmem [resolvable:$true] %s527_s0 }
  0x26   : > { %s2659_s6 = sld [smem:[#allocation32_spill]] }
  0x27   : > { %p2289_p1 = pneg %p2275_p13 }
  0x2c   : > { %s1859_s29 = scalar_lea.hbm %s2659_s6, 256 }
  0x2d   : > { %p1860_p0 = scmp.ne.s32.totalorder %s2659_s6, %s1859_s29  ;;  %p1866_p5 = scmp.lt.u32.totalorder %s1859_s29, %s2659_s6 }
  0x2f   : > { %p1862_p2 = pnand %p2289_p1, %p1860_p0 }
  0x31   : > { %p1863_p3 = pneg %p1862_p2 }
  0x33   : > { %p1868_p6 = pnand %p1866_p5, %p1863_p3 }
  0x35   : > { %1871 = shalt.err (!%p1868_p6)
}
  0x36   : > { %s1872_s25 = scalar_lea.vmem %s504_s23, 256  ;;  %p1880_p8 = scmp.lt.s32.totalorder %s504_s23, %s504_s23 }
  0x37   : > { %p1873_p7 = scmp.ne.s32.totalorder %s504_s23, %s1872_s25  ;;  %p1881_p4 = scmp.lt.s32.totalorder %s1872_s25, %s1872_s25 }
  0x39   : > { %p1875_p9 = pnand %p1873_p7, %p2289_p1  ;;  %p1882_p11 = por %p1881_p4, %p1880_p8 }
  0x3b   : > { %p1876_p12 = pneg %p1875_p9 }
  0x3d   : > { %p1883_p10 = pnand %p1882_p11, %p1876_p12 }
  0x3f   : > { %1886 = shalt.err (!%p1883_p10)
}
  0x40   : > { %s2101_s19 = smov 64   ;;  %s2102_s24 = smov 4  }
  0x41   : > { %1739 = dma.hbm_to_vmem [thread:$0]  (!%p2275_p13), %s2659_s6, 256, %s504_s23, [#allocation11], %s2101_s19, %s2101_s19, %s2102_s24  }
  0x42   : > { %s1887_s2 = scalar_lea.hbm %s2610_s8, 256 }
  0x43   : > { %p1888_p4 = scmp.ne.s32.totalorder %s2610_s8, %s1887_s2  ;;  %p1894_p11 = scmp.lt.u32.totalorder %s1887_s2, %s2610_s8 }
  0x45   : > { %p1890_p8 = pnand %p1888_p4, %p2289_p1 }
  0x47   : > { %p1891_p10 = pneg %p1890_p8 }
  0x49   : > { %p1896_p0 = pnand %p1894_p11, %p1891_p10 }
  0x4b   : > { %1899 = shalt.err (!%p1896_p0)
}
  0x4c   : > { %s1900_s23 = scalar_lea.vmem %s2279_s0, 256  ;;  %p1908_p6 = scmp.lt.s32.totalorder %s2279_s0, %s2279_s0 }
  0x4d   : > { %p1901_p2 = scmp.ne.s32.totalorder %s2279_s0, %s1900_s23  ;;  %p1909_p7 = scmp.lt.s32.totalorder %s1900_s23, %s1900_s23 }
  0x4f   : > { %p1903_p3 = pnand %p1901_p2, %p2289_p1  ;;  %p1910_p9 = por %p1909_p7, %p1908_p6 }
  0x51   : > { %p1904_p5 = pneg %p1903_p3 }
  0x53   : > { %p1911_p12 = pnand %p1910_p9, %p1904_p5 }
  0x55   : > { %1914 = shalt.err (!%p1911_p12)
}
  0x56   : > { %1745 = dma.hbm_to_vmem [thread:$0]  (!%p2275_p13), %s2610_s8, 256, %s2279_s0, [#allocation14], %s2101_s19, %s2101_s19, %s2102_s24  }
  0x57   : > { %s2103_s17 = smov [#allocation7]   ;;  %s2104_s18 = smov [#allocation12]  }
  0x58   : > { %s487_s2 = sshll.u32 %s2103_s17, 4  ;;  %s517_s29 = sshll.u32 %s2104_s18, 4  ;;  %s488_s2 = int_to_ptr.vmem [resolvable:$true] %s487_s2  ;;  %s518_s29 = int_to_ptr.vmem [resolvable:$true] %s517_s29 }
  0x59   : > { %s1915_s25 = scalar_lea.hbm %s2606_s4, 256 }
  0x5a   : > { %p1916_p4 = scmp.ne.s32.totalorder %s2606_s4, %s1915_s25  ;;  %p1922_p11 = scmp.lt.u32.totalorder %s1915_s25, %s2606_s4 }
  0x5c   : > { %p1918_p8 = pnand %p1916_p4, %p2289_p1 }
  0x5e   : > { %p1919_p10 = pneg %p1918_p8 }
  0x60   : > { %p1924_p0 = pnand %p1922_p11, %p1919_p10 }
  0x62   : > { %1927 = shalt.err (!%p1924_p0)
}
  0x63   : > { %s1928_s0 = scalar_lea.vmem %s488_s2, 256  ;;  %p1936_p6 = scmp.lt.s32.totalorder %s488_s2, %s488_s2 }
  0x64   : > { %p1929_p2 = scmp.ne.s32.totalorder %s488_s2, %s1928_s0  ;;  %p1937_p7 = scmp.lt.s32.totalorder %s1928_s0, %s1928_s0 }
  0x66   : > { %p1931_p3 = pnand %p1929_p2, %p2289_p1  ;;  %p1938_p9 = por %p1937_p7, %p1936_p6 }
  0x68   : > { %p1932_p5 = pneg %p1931_p3 }
  0x6a   : > { %p1939_p12 = pnand %p1938_p9, %p1932_p5 }
  0x6c   : > { %1942 = shalt.err (!%p1939_p12)
}
  0x6d   : > { %1736 = dma.hbm_to_vmem [thread:$0]  (!%p2275_p13), %s2606_s4, 256, %s488_s2, [#allocation8], %s2101_s19, %s2101_s19, %s2102_s24  }
  0x6e   : > { %s1943_s18 = scalar_lea.hbm %s2609_s7, 16 }
  0x6f   : > { %p1944_p4 = scmp.ne.s32.totalorder %s2609_s7, %s1943_s18  ;;  %p1950_p11 = scmp.lt.u32.totalorder %s1943_s18, %s2609_s7 }
  0x71   : > { %p1946_p8 = pnand %p1944_p4, %p2289_p1 }
  0x73   : > { %p1947_p10 = pneg %p1946_p8 }
  0x75   : > { %p1952_p0 = pnand %p1950_p11, %p1947_p10 }
  0x77   : > { %1955 = shalt.err (!%p1952_p0)
}
  0x78   : > { %s1956_s15 = scalar_lea.vmem %s518_s29, 16  ;;  %s1963_s19 = scalar_lea.vmem %s518_s29, 32 }
  0x79   : > { %p1957_p2 = scmp.ne.s32.totalorder %s518_s29, %s1956_s15  ;;  %p1964_p6 = scmp.lt.s32.totalorder %s518_s29, %s518_s29 }
  0x7a   : > { %p1965_p7 = scmp.lt.s32.totalorder %s1963_s19, %s1956_s15 }
  0x7b   : > { %p1959_p3 = pnand %p1957_p2, %p2289_p1 }
  0x7c   : > { %p1966_p9 = por %p1965_p7, %p1964_p6 }
  0x7d   : > { %p1960_p5 = pneg %p1959_p3 }
  0x7f   : > { %p1967_p12 = pnand %p1966_p9, %p1960_p5 }
  0x81   : > { %1970 = shalt.err (!%p1967_p12)
}
  0x82   : > { %1742 = dma.hbm_to_vmem [thread:$0]  (!%p2275_p13), %s2609_s7, 16, %s518_s29, [#allocation11]  }
  0x83   : > { %s2105_s0 = smov [#allocation15]   ;;  %s1971_s17 = scalar_lea.hbm %s2611_s9, 16 }
  0x84   : > { %s541_s6 = sshll.u32 %s2105_s0, 4  ;;  %p1972_p4 = scmp.ne.s32.totalorder %s2611_s9, %s1971_s17  ;;  %s542_s6 = int_to_ptr.vmem [resolvable:$true] %s541_s6 }
  0x85   : > { %p1978_p11 = scmp.lt.u32.totalorder %s1971_s17, %s2611_s9 }
  0x86   : > { %p1974_p8 = pnand %p1972_p4, %p2289_p1 }
  0x88   : > { %p1975_p10 = pneg %p1974_p8 }
  0x8a   : > { %p1980_p0 = pnand %p1978_p11, %p1975_p10 }
  0x8c   : > { %1983 = shalt.err (!%p1980_p0)
}
  0x8d   : > { %s1984_s29 = scalar_lea.vmem %s542_s6, 16  ;;  %s1991_s23 = scalar_lea.vmem %s542_s6, 32 }
  0x8e   : > { %p1985_p2 = scmp.ne.s32.totalorder %s542_s6, %s1984_s29  ;;  %p1992_p6 = scmp.lt.s32.totalorder %s542_s6, %s542_s6 }
  0x8f   : > { %p1993_p7 = scmp.lt.s32.totalorder %s1991_s23, %s1984_s29 }
  0x90   : > { %p1987_p3 = pnand %p1985_p2, %p2289_p1 }
  0x91   : > { %p1994_p9 = por %p1993_p7, %p1992_p6 }
  0x92   : > { %p1988_p5 = pneg %p1987_p3 }
  0x94   : > { %p1995_p12 = pnand %p1994_p9, %p1988_p5 }
  0x96   : > { %1998 = shalt.err (!%p1995_p12)
}
  0x97   : > { %1748 = dma.hbm_to_vmem [thread:$0]  (!%p2275_p13), %s2611_s9, 16, %s542_s6, [#allocation14]  }
  0x98   : > { %p2661_p4 = scmp.ne.s32.totalorder %s2656_s26, 0 }
  0x99   : > { %p2662_p8 = scmp.ne.s32.totalorder (!%p2661_p4), %s2657_s27, 0 }
  0x9a   : > { %596 = sbr.rel (%p2661_p4) target bundleno = 2719 (0xa9f), region = 92 }
  0xa1   : > { %2056 = dma.done.wait (%p2662_p8), [#allocation8], 256  }
  0xa2   : > { %2058 = vsyncadd (%p2662_p8), [#allocation8], 4294967040 }
  0xa3   : > { %2060 = dma.done.wait (%p2662_p8), [#allocation11], 272  }
  0xa4   : > { %2062 = vsyncadd (%p2662_p8), [#allocation11], 4294967024 }
  0xa5   : > { %2064 = dma.done.wait (%p2662_p8), [#allocation14], 272  }
  0xa6   : > { %2066 = vsyncadd (%p2662_p8), [#allocation14], 4294967024  ;;  %p673_p13 = scmp.lt.s32.totalorder %s2085_s30, 1  ;;  %s2663_s2 = sld [smem:[#allocation29_spill]]  ;;  %vm693_vm0 = vcmask 261120   ;;  %v1833_v12 = vld [vmem:[#allocation7] sm:$0xff]  }
  0xa7   : > { %s2664_s16 = sld [smem:[#allocation30_spill]]  ;;  %v1834_v13 = vld [vmem:[#allocation10] sm:$0xff]   ;;  %v2106_v14 = vmov 0.0   ;;  %v1835_v15 = vld [vmem:[#allocation7 + $0x8] sm:$0xff]   ;;  %v1836_v16 = vld [vmem:[#allocation10 + $0x8] sm:$0xff]   ;;  %s670_s27 = sand.u32 1, %s2077_s28  }
  0xa8   : > { %s674_s21 = scalar_select %p673_p13, %s2085_s30, 1  ;;  %1647 = vmatprep.subr.bf16.mxu0 %v2106_v14  ;;  %1655 = vmatprep.subr.bf16.mxu1 %v2106_v14  ;;  %vm2107_vm1 = vmmov 0   ;;  %v1621_v24 = vld [vmem:[%s2612_s10] ss:$0 sm:$0xff]  ;;  %v1579_v38 = vld [vmem:[#allocation12] ss:$0 sm:$0xff] }
  0xa9   : > { %1648 = vmatpush3.bf16.msra.mxu0 %v1833_v12  ;;  %1656 = vmatpush3.bf16.msra.mxu1 %v1834_v13  ;;  %s2430_s18 = sshll.u32 %s670_s27, 3  ;;  %v1622_v26 = vld [vmem:[%s2613_s11] ss:$0 sm:$0xff]  ;;  %s2665_s19 = sld [smem:[#allocation31_spill]]  ;;  %vm854_vm2 = vcmask 125952  }
  0xaa   : > { %s1572_s26 = sshll.u32 %s674_s21, 3  ;;  %1649 = vmatprep.subr.bf16.mxu0 %v2106_v14  ;;  %1657 = vmatprep.subr.bf16.mxu1 %v2106_v14  ;;  %v1575_v37 = vld [vmem:[%s2607_s5] ss:$0 sm:$0xff]  ;;  %s2468_s1 = smov 0  }
  0xab   : > { %1651 = vmatprep.mubr.msk.bf16.mxu0 %vm2107_vm1, %v2106_v14  ;;  %1659 = vmatprep.mubr.msk.bf16.mxu1 %vm2107_vm1, %v2106_v14  ;;  %v1585_v51 = vld [vmem:[%s2605_s3] ss:$0 sm:$0xff] }
  0xac   : > { %s676_s0 = scalar_lea.vmem %s2663_s2, %s1572_s26 }
  0xad   : > { %s2413_s17 = scalar_lea.vmem %s2664_s16, %s1572_s26  ;;  %v2415_v0 = vld [vmem:[%s676_s0] sm:$0xff]  ;;  %1650 = vmatpush3.bf16.msra.mxu0 %v1835_v15  ;;  %1658 = vmatpush3.bf16.msra.mxu1 %v1836_v16  ;;  %s2108_s0 = smov 112  }
  0xae   : > { %v694_v1 = vsel %vm693_vm0, %v2415_v0, 0.0  ;;  %1663 = vmatprep.subr.bf16.mxu0 %v2106_v14  ;;  %s672_s16 = scalar_lea.vmem [#allocation16], %s2430_s18 }
  0xaf   : > { %695 = vadd.xlane.f32.xlu0 %v694_v1  ;;  %s2666_s21 = smov %s2665_s19  ;;  %v1837_v31 = vld [vmem:[%s2665_s19] sm:$0xff]  }
  0xb0   : > { %v1838_v34 = vld [vmem:[%s2666_s21 + $0x8] sm:$0xff]  }
  0xb3   : > { %881 = vadd.xlane.f32.xlu0 %v694_v1 }
 0x13c   : > { %v696_v2 = vpop.xlane.xlu0 %695 }
 0x13d   : > { %v698_v3 = vmul.f32 0.03125, %v696_v2 }
 0x13f   : > { %v699_v4 = vsub.f32 %v2415_v0, %v698_v3 }
 0x140   : > { %v882_v5 = vpop.xlane.xlu0 %881 }
 0x141   : > { %v884_v6 = vmul.f32 0.03125, %v882_v5  ;;  %v700_v7 = vmul.f32 %v699_v4, %v699_v4 }
 0x143   : > { %v885_v8 = vsub.f32 %v2415_v0, %v884_v6  ;;  %v701_v9 = vsel %vm693_vm0, %v700_v7, 0.0 }
 0x144   : > { %702 = vadd.xlane.f32.xlu1 %v701_v9 }
 0x145   : > { %v886_v10 = vmul.f32 %v885_v8, %v885_v8 }
 0x147   : > { %v887_v11 = vsel %vm693_vm0, %v886_v10, 0.0 }
 0x148   : > { %888 = vadd.xlane.f32.xlu1 %v887_v11 }
 0x1d1   : > { %v703_v17 = vpop.xlane.xlu1 %702 }
 0x1d2   : > { %v704_v18 = vmul.f32 0.03125, %v703_v17 }
 0x1d4   : > { %v705_v19 = vadd.f32 1e-05, %v704_v18 }
 0x1d5   : > { %v889_v20 = vpop.xlane.xlu1 %888 }
 0x1d6   : > { %1839 = vrsqrt.f32 %v705_v19  ;;  %v890_v21 = vmul.f32 0.03125, %v889_v20 }
 0x1d8   : > { %v891_v22 = vadd.f32 1e-05, %v890_v21 }
 0x1da   : > { %1841 = vrsqrt.f32 %v891_v22 }
 0x1e0   : > { %v1840_v23 = vpop.eup %1839 }
 0x1e1   : > { %v707_v25 = vmul.f32 %v1840_v23, %v699_v4 }
 0x1e3   : > { %v714_v27 = vmul.f32 %v1621_v24, %v707_v25 }
 0x1e4   : > { %v1842_v28 = vpop.eup %1841 }
 0x1e5   : > { %v893_v29 = vmul.f32 %v1842_v28, %v885_v8  ;;  %v721_v30 = vadd.f32 %v1622_v26, %v714_v27 }
 0x1e7   : > { %v722_v32 = vpack.c.bf16 %v721_v30, %v721_v30  ;;  %v900_v33 = vmul.f32 %v1621_v24, %v893_v29 }
 0x1e9   : > { %1652 = vmatmul.mubr.msk.bf16.vlgmr.msra.gmra.mrb[0].mxu0 %vm693_vm0, %v722_v32  ;;  %1660 = vmatmul.mubr.msk.bf16.vlgmr.msra.gmra.mrb[0].mxu1 %vm693_vm0, %v722_v32  ;;  %v907_v35 = vadd.f32 %v1622_v26, %v900_v33 }
 0x1ea   : > { %1664 = vmatpush3.bf16.msra.mxu0 %v1837_v31  ;;  %1667 = vmatprep.mubr.msk.bf16.mxu0 %vm2107_vm1, %v2106_v14 }
 0x1eb   : > { %1665 = vmatprep.subr.bf16.mxu0 %v2106_v14  ;;  %v908_v36 = vpack.c.bf16 %v907_v35, %v907_v35 }
 0x1ee   : > { %1666 = vmatpush3.bf16.msra.mxu0 %v1838_v34 }
 0x1f1   : > { %1668 = vmatmul.mubr.msk.bf16.vlgmr.msra.gmra.mrb[4].mxu0 %vm693_vm0, %v908_v36 }
 0x2bc   : > { %v783_v39 = vpop.f32.mrb[0].mxu0  ;;  %v847_v40 = vpop.f32.mrb[0].mxu1 }
 0x2bd   : > { %v784_v41 = vadd.f32 %v1575_v37, %v783_v39  ;;  %v848_v42 = vadd.f32 %v1579_v38, %v847_v40  ;;  %v1653_v43 = vpop.f32.mrb[1].mxu0  ;;  %v1661_v44 = vpop.f32.mrb[1].mxu1 }
 0x2be   : > { %v786_v45 = vpop.f32.mrb[2].mxu0  ;;  %v850_v46 = vpop.f32.mrb[2].mxu1 }
 0x2bf   : > { %v789_v47 = vpack.c.bf16 %v784_v41, %v784_v41  ;;  %v853_v48 = vpack.c.bf16 %v848_v42, %v848_v42  ;;  %v1654_v49 = vpop.f32.mrb[3].mxu0  ;;  %v1662_v50 = vpop.f32.mrb[3].mxu1 }
 0x2c1   : > { %855 = vst.msk [vmem:[#allocation3] sm:$0xf] %vm854_vm2, %v789_v47  ;;  %856 = vst.msk [vmem:[#allocation4] sm:$0xf] %vm854_vm2, %v853_v48  ;;  %870 = vrot.lane.b32.xlu1 %v853_v48, %s2108_s0  ;;  %860 = vrot.lane.b32.xlu0 %v789_v47, %s2108_s0 }
 0x2c4   : > { %v969_v52 = vpop.f32.mrb[4].mxu0 }
 0x2c5   : > { %v970_v53 = vadd.f32 %v1585_v51, %v969_v52  ;;  %v1669_v54 = vpop.f32.mrb[5].mxu0 }
 0x2c6   : > { %v972_v55 = vpop.f32.mrb[6].mxu0 }
 0x2c7   : > { %v975_v56 = vmul.f32 0.25, %v970_v53  ;;  %v1670_v57 = vpop.f32.mrb[7].mxu0 }
 0x2c9   : > { %v976_v58 = vpack.c.bf16 %v975_v56, %v975_v56 }
 0x2cb   : > { %978 = vst.msk [vmem:[#allocation2] sm:$0xf] %vm854_vm2, %v976_v58  ;;  %982 = vrot.lane.b32.xlu1 %v976_v58, %s2108_s0 }
 0x333   : > { %v871_v59 = vpop.permute.xlu1 %870  ;;  %v861_v60 = vpop.permute.xlu0 %860 }
 0x334   : > { %875 = vst.msk [vmem:[#allocation4 + $0x4] sm:$0xf] %vm854_vm2, %v871_v59  ;;  %866 = vst.msk [vmem:[#allocation3 + $0x4] sm:$0xf] %vm854_vm2, %v861_v60 }
 0x33d   : > { %v983_v61 = vpop.permute.xlu1 %982 }
 0x33e   : > { %986 = vst.msk [vmem:[#allocation2 + $0x4] sm:$0xf] %vm854_vm2, %v983_v61 }
 0x33f LB: >> { %v2109_v62 = vmov 0.0   ;;  %vm2110_vm3 = vmmov 0   ;;  %s2474_s22 = sshll.u32 %s2097_s1, 2  ;;  %vm1003_vm4 = vcmask 130048   ;;  %vm1050_vm5 = vcmask 64512   ;;  %s992_s1 = sadd.s32 1, %s2097_s1   ;;  %s2097_s1 = sphi %s2468_s1, %s992_s1  }
 0x340   : >> { %1671 = vmatprep.subr.bf16.mxu0 %v2109_v62  ;;  %1673 = vmatprep.mubr.msk.bf16.mxu0 %vm2110_vm3, %v2109_v62  ;;  %s997_s25 = scalar_lea.vmem [#allocation3], %s2474_s22  ;;  %s994_s29 = scalar_lea.vmem [#allocation2], %s2474_s22  ;;  %vm1069_vm6 = vcmask 1043456  }
 0x341   : >> { %1677 = vmatprep.subr.bf16.mxu1 %v2109_v62  ;;  %1679 = vmatprep.mubr.msk.bf16.mxu1 %vm2110_vm3, %v2109_v62  ;;  %v998_v63 = vld [vmem:[%s997_s25] sm:$0xf]  ;;  %s1000_s23 = scalar_lea.vmem %s2413_s17, %s2474_s22  ;;  %s1064_s15 = scalar_lea.vmem [#allocation4], %s2474_s22 }
 0x342   : >> { %v1008_v1 = vsel %vm1003_vm4, %v998_v63, 0  ;;  %v1001_v3 = vld [vmem:[%s1000_s23] sm:$0xf]  ;;  %s1115_s19 = scalar_lea.vmem [#allocation5], %s2474_s22  ;;  %p989_p1 = scmp.ge.s32.totalorder %s992_s1, 2  }
 0x343   : >> { %1672 = vmatpush3.bf16.xpose.msra.mxu0 %v1008_v1  ;;  %v1002_v4 = vunpack.c.l.bf16 %v1001_v3  ;;  %v1065_v17 = vld [vmem:[%s1064_s15] sm:$0xf]  ;;  %s2111_s26 = smov (%p989_p1), 16   ;;  %v1847_v30 = vld [vmem:[#allocation13] sm:$0xff] (%p989_p1)   ;;  %v1848_v31 = vld [vmem:[#allocation13 + $0x8] sm:$0xff] (%p989_p1)   ;;  %vm1125_vm7 = vcmask (%p989_p1), 257152  }
 0x344   : >> { %v1071_v18 = vsel %vm1069_vm6, %v1065_v17, 0  ;;  %1699 = vmatprep.subr.bf16.mxu0 (%p989_p1), %v2106_v14  ;;  %v1597_v34 = vld [vmem:[#allocation15] ss:$0 sm:$0xff] (%p989_p1)  ;;  %v1849_v47 = vld [vmem:[%s2616_s14] sm:$0xff] (%p989_p1)   ;;  %s2667_s22 = sld [smem:[#allocation33_spill]] (%p989_p1)  ;;  %s2668_s23 = sld [smem:[#allocation35_spill]] (%p989_p1) }
 0x345   : >> { %v995_v2 = vld [vmem:[%s994_s29] sm:$0xf]  ;;  %1678 = vmatpush3.bf16.msra.mxu1 %v1071_v18  ;;  %s2669_s6 = sld [smem:[#allocation34_spill]] (%p989_p1)  ;;  %vm1340_vm8 = vcmask (%p989_p1), 523264   ;;  %s2671_s25 = sld [smem:[#allocation26_spill]] (%p989_p1) }
 0x346   : > { %1683 = vmatprep.subr.bf16.mxu1 (%p989_p1), %v2106_v14  ;;  %v1601_v52 = vld [vmem:[%s2614_s12] ss:$0 sm:$0xff] (%p989_p1)  ;;  %s1614_s29 = sshll.u32 (%p989_p1), %s2085_s30, 7  ;;  %s1401_s15 = sshll.u32 (%p989_p1), %s672_s16, 4  ;;  %s2552_s15 = int_to_ptr.vmem [resolvable:$true] %s1401_s15 }
 0x347   : > { %s2672_s17 = sld [smem:[#allocation37_spill]] (%p989_p1)  ;;  %s1387_s30 = scalar_lea.sflag (%p989_p1), [#allocation9], %s670_s27 }
 0x348   : > { %s1999_s24 = scalar_lea.vmem (%p989_p1), %s2552_s15, 128  ;;  %s2112_s2 = smov (%p989_p1), [#allocation16]  }
 0x349   : > { %p2000_p10 = scmp.ne.s32.totalorder (%p989_p1), %s2552_s15, %s1999_s24  ;;  %s2003_s0 = sshll.u32 (%p989_p1), %s2112_s2, 4  ;;  %s2004_s0 = int_to_ptr.vmem [resolvable:$false] %s2003_s0 }
 0x34a   : >> { %1674 = vmatmul.mubr.msk.bf16.vlgmr.msra.gmra.mrb[0].mxu0 %vm1003_vm4, %v995_v2  ;;  %v1602_v54 = vld [vmem:[%s2667_s22] ss:$0 sm:$0xff] (%p989_p1)  ;;  %v1852_v59 = vld [vmem:[%s2668_s23 + $0x8] sm:$0xff] (%p989_p1)   ;;  %v1853_v60 = vld [vmem:[%s2668_s23 + $0x10] sm:$0xff] (%p989_p1)   ;;  %s2670_s22 = sld [smem:[#allocation36_spill]] (%p989_p1)  ;;  %p2006_p3 = scmp.lt.s32.totalorder (%p989_p1), %s2552_s15, %s2004_s0 }
 0x34b   : > { %1707 = vmatprep.mubr.msk.bf16.mxu0 (%p989_p1), %vm2107_vm1, %v2106_v14  ;;  %v1851_v58 = vld [vmem:[%s2668_s23] sm:$0xff] (%p989_p1)   ;;  %v1854_v61 = vld [vmem:[%s2668_s23 + $0x18] sm:$0xff] (%p989_p1)   ;;  %p2673_p11 = scmp.ne.s32.totalorder (%p989_p1), %s2671_s25, 0 }
 0x34c   : > { %1700 = vmatpush3.bf16.msra.mxu0 (%p989_p1), %v1851_v58  ;;  %v1603_v62 = vld [vmem:[%s2669_s6] ss:$0 sm:$0xff] (%p989_p1)  ;;  %s2005_s6 = scalar_lea.vmem (%p989_p1), %s2004_s0, 256 }
 0x34d   : > { %1701 = vmatprep.subr.bf16.mxu0 (%p989_p1), %v2106_v14  ;;  %s2550_s20 = scalar_lea.hbm (%p989_p1), %s2672_s17, %s1614_s29  ;;  %p2001_p0 = pnand (%p989_p1), %p2000_p10, %p2673_p11 }
 0x34e   : > { %p2007_p5 = scmp.lt.s32.totalorder (%p989_p1), %s2005_s6, %s1999_s24 }
 0x34f   : > { %p2002_p2 = pneg (%p989_p1), %p2001_p0 }
 0x350   : > { %1702 = vmatpush3.bf16.msra.mxu0 (%p989_p1), %v1852_v59  ;;  %p2008_p6 = por (%p989_p1), %p2007_p5, %p2006_p3 }
 0x351   : > { %1703 = vmatprep.subr.bf16.mxu0 (%p989_p1), %v2106_v14 }
 0x352   : > { %p2009_p7 = pnand (%p989_p1), %p2008_p6, %p2002_p2 }
 0x354   : > { %1704 = vmatpush3.bf16.msra.mxu0 (%p989_p1), %v1853_v60 }
 0x355   : > { %1705 = vmatprep.subr.bf16.mxu0 (%p989_p1), %v2106_v14 }
 0x358   : > { %1706 = vmatpush3.bf16.msra.mxu0 (%p989_p1), %v1854_v61 }
 0x41d   : >> { %v1044_v5 = vpop.f32.mrb[0].mxu0 }
 0x41e   : >> { %v1045_v6 = vadd.f32 %v1044_v5, %v1002_v4  ;;  %v1675_v7 = vpop.f32.mrb[1].mxu0 }
 0x41f   : >> { %v1047_v8 = vpop.f32.mrb[2].mxu0 }
 0x420   : >> { %v1676_v9 = vpop.f32.mrb[3].mxu0  ;;  %v1051_v10 = vsel %vm1050_vm5, %v1045_v6, -inf }
 0x421   : >> { %1052 = vmax.xlane.f32.xlu0 %v1051_v10 }
 0x4ae   : >> { %v1053_v11 = vpop.xlane.xlu0 %1052 }
 0x4af   : >> { %v1054_v12 = vsub.f32 %v1045_v6, %v1053_v11 }
 0x4b1   : >> { %v1055_v13 = vmul.f32 1.442695, %v1054_v12 }
 0x4b3   : >> { %1843 = vpow2.f32 %v1055_v13 }
 0x4bd   : >> { %v1844_v15 = vpop.eup %1843 }
 0x4be   : >> { %v1057_v16 = vsel %vm1050_vm5, %v1844_v15, 0.0 }
 0x4bf   : >> { %1058 = vadd.xlane.f32.xlu0 %v1057_v16 }
 0x54c   : >> { %v1059_v19 = vpop.xlane.xlu0 %1058 }
 0x54d   : >> { %1845 = vrcp.f32 %v1059_v19 }
 0x557   : >> { %v1846_v20 = vpop.eup %1845 }
 0x558   : >> { %v1061_v21 = vmul.f32 %v1846_v20, %v1844_v15  ;;  %v1607_v15 = vld [vmem:[%s2670_s22] ss:$0 sm:$0xff] (%p989_p1) }
 0x55a   : >> { %v1062_v22 = vpack.c.bf16 %v1061_v21, %v1061_v21 }
 0x55c   : >> { %1680 = vmatmul.mubr.msk.bf16.vlgmr.msra.gmra.mrb[0].mxu1 %vm1050_vm5, %v1062_v22 }
 0x55d   : > { %1687 = vmatprep.mubr.msk.bf16.mxu1 (%p989_p1), %vm2107_vm1, %v2106_v14  ;;  %1684 = vmatpush3.bf16.msra.mxu1 (%p989_p1), %v1847_v30 }
 0x55e   : > { %1685 = vmatprep.subr.bf16.mxu1 (%p989_p1), %v2106_v14 }
 0x561   : > { %1686 = vmatpush3.bf16.msra.mxu1 (%p989_p1), %v1848_v31 }
 0x562   : > { %1691 = vmatprep.subr.bf16.mxu1 (%p989_p1), %v2106_v14 }
 0x62c   : > { %991 = sbr.rel (!%p989_p1) target bundleno = 831 (0x33f), region = 172 }
 0x62f   : >> { %v1107_v23 = vpop.f32.mrb[0].mxu1 }
 0x630   : >> { %v1113_v24 = vpack.c.bf16 %v1107_v23, %v1107_v23  ;;  %v1681_v25 = vpop.f32.mrb[1].mxu1 }
 0x631   : >> { %v1110_v26 = vpop.f32.mrb[2].mxu1 }
 0x632   : >> { %1116 = vst.msk [vmem:[%s1115_s19] sm:$0xf] %vm854_vm2, %v1113_v24  ;;  %v1682_v27 = vpop.f32.mrb[3].mxu1 }
 0x639   : > { %v1120_v28 = vld [vmem:[#allocation5 + $0x4] sm:$0xf]  ;;  %v1117_v29 = vld [vmem:[#allocation5] sm:$0xf] }
 0x63a   : > { %1122 = vrot.lane.b32.xlu0 %v1120_v28, %s2111_s26  ;;  %1118 = vst.msk [vmem:[#allocation6] sm:$0xf] %vm854_vm2, %v1117_v29 }
 0x6ac   : > { %v1123_v32 = vpop.permute.xlu0 %1122 }
 0x6ad   : > { %1126 = vst.msk [vmem:[#allocation6] sm:$0xf] %vm1125_vm7, %v1123_v32 }
 0x6b4   : > { %v1127_v33 = vld [vmem:[#allocation6] sm:$0xf] }
 0x6b5   : > { %1688 = vmatmul.mubr.msk.bf16.vlgmr.msra.gmra.mrb[0].mxu1 %vm693_vm0, %v1127_v33 }
 0x6b6   : > { %1695 = vmatprep.mubr.msk.bf16.mxu1 %vm2107_vm1, %v2106_v14  ;;  %1692 = vmatpush3.bf16.msra.mxu1 %v1849_v47 }
 0x6b7   : > { %1693 = vmatprep.subr.bf16.mxu1 %v2106_v14 }
 0x788   : > { %v1188_v35 = vpop.f32.mrb[0].mxu1 }
 0x789   : > { %v1189_v36 = vadd.f32 %v1597_v34, %v1188_v35  ;;  %v1689_v37 = vpop.f32.mrb[1].mxu1 }
 0x78a   : > { %v1191_v38 = vpop.f32.mrb[2].mxu1 }
 0x78b   : > { %v2502_v39 = vadd.f32 %v1189_v36, %v2415_v0  ;;  %v1690_v40 = vpop.f32.mrb[3].mxu1  ;;  %v1850_v0 = vld [vmem:[%s2616_s14 + $0x8] sm:$0xff]  }
 0x78c   : > { %1694 = vmatpush3.bf16.msra.mxu1 %v1850_v0 }
 0x78d   : > { %v1197_v41 = vsel %vm693_vm0, %v2502_v39, 0.0 }
 0x78e   : > { %1198 = vadd.xlane.f32.xlu0 %v1197_v41 }
 0x81b   : > { %v1199_v42 = vpop.xlane.xlu0 %1198 }
 0x81c   : > { %v1200_v43 = vmul.f32 0.03125, %v1199_v42 }
 0x81e   : > { %v1201_v44 = vsub.f32 %v2502_v39, %v1200_v43 }
 0x820   : > { %v1202_v45 = vmul.f32 %v1201_v44, %v1201_v44 }
 0x822   : > { %v1203_v46 = vsel %vm693_vm0, %v1202_v45, 0.0 }
 0x823   : > { %1204 = vadd.xlane.f32.xlu1 %v1203_v46 }
 0x8b0   : > { %v1205_v48 = vpop.xlane.xlu1 %1204 }
 0x8b1   : > { %v1206_v49 = vmul.f32 0.03125, %v1205_v48 }
 0x8b3   : > { %v1207_v50 = vadd.f32 1e-05, %v1206_v49 }
 0x8b5   : > { %1855 = vrsqrt.f32 %v1207_v50 }
 0x8bf   : > { %v1856_v51 = vpop.eup %1855 }
 0x8c0   : > { %v1209_v53 = vmul.f32 %v1856_v51, %v1201_v44 }
 0x8c2   : > { %v1216_v55 = vmul.f32 %v1601_v52, %v1209_v53 }
 0x8c4   : > { %v1223_v56 = vadd.f32 %v1602_v54, %v1216_v55 }
 0x8c6   : > { %v1224_v57 = vpack.c.bf16 %v1223_v56, %v1223_v56 }
 0x8c8   : > { %1696 = vmatmul.mubr.msk.bf16.vlgmr.msra.gmra.mrb[4].mxu1 %vm693_vm0, %v1224_v57 }
 0x99b   : > { %v1285_v63 = vpop.f32.mrb[4].mxu1 }
 0x99c   : > { %v1286_v1 = vadd.f32 %v1603_v62, %v1285_v63  ;;  %v1697_v2 = vpop.f32.mrb[5].mxu1 }
 0x99d   : > { %v1288_v3 = vpop.f32.mrb[6].mxu1 }
 0x99e   : > { %v1292_v4 = vmul.f32 0.044715, %v1286_v1  ;;  %v1698_v5 = vpop.f32.mrb[7].mxu1  ;;  %v1291_v14 = vmul.f32 0.5, %v1286_v1 }
 0x9a0   : > { %v1293_v6 = vmul.f32 %v1292_v4, %v1286_v1 }
 0x9a2   : > { %v1294_v7 = vmul.f32 %v1293_v6, %v1286_v1 }
 0x9a4   : > { %v1295_v8 = vadd.f32 %v1294_v7, %v1286_v1 }
 0x9a6   : > { %v1296_v9 = vmul.f32 0.7978846, %v1295_v8 }
 0x9a8   : > { %1857 = vtanh.f32 %v1296_v9 }
 0x9b2   : > { %v1858_v10 = vpop.eup %1857 }
 0x9b3   : > { %v1298_v11 = vadd.f32 1.0, %v1858_v10 }
 0x9b5   : > { %v1299_v12 = vmul.f32 %v1298_v11, %v1291_v14 }
 0x9b7   : > { %v1300_v13 = vpack.c.bf16 %v1299_v12, %v1299_v12 }
 0x9b9   : > { %1708 = vmatmul.mubr.msk.bf16.vlgmr.msra.gmra.mrb[0].mxu0 %vm1340_vm8, %v1300_v13 }
 0xa8c   : > { %v1378_v16 = vpop.f32.mrb[0].mxu0 }
 0xa8d   : > { %v1379_v17 = vadd.f32 %v1607_v15, %v1378_v16  ;;  %v1709_v18 = vpop.f32.mrb[1].mxu0 }
 0xa8e   : > { %v1381_v19 = vpop.f32.mrb[2].mxu0 }
 0xa8f   : > { %v1384_v20 = vadd.f32 %v1379_v17, %v2502_v39  ;;  %v1710_v21 = vpop.f32.mrb[3].mxu0 }
 0xa91   : > { %1385 = vst.msk [vmem:[%s672_s16] sm:$0xff] %vm693_vm0, %v1384_v20 }
 0xa92   : > { %2012 = shalt.err (!%p2009_p7)
}
 0xa93   : > { %s2013_s27 = scalar_lea.hbm %s2550_s20, 128  ;;  %s2017_s13 = scalar_lea.hbm %s2672_s17, 256 }
 0xa94   : > { %p2014_p9 = scmp.ne.s32.totalorder %s2550_s20, %s2013_s27  ;;  %p2018_p8 = scmp.lt.u32.totalorder %s2550_s20, %s2672_s17 }
 0xa95   : > { %p2019_p13 = scmp.lt.u32.totalorder %s2017_s13, %s2013_s27  ;;  %p2021_p10 = scmp.lt.u32.totalorder %s2013_s27, %s2550_s20 }
 0xa96   : > { %p2015_p12 = pnand %p2014_p9, %p2673_p11 }
 0xa97   : > { %p2020_p1 = por %p2019_p13, %p2018_p8 }
 0xa98   : > { %p2016_p4 = pneg %p2015_p12 }
 0xa99   : > { %p2022_p0 = por %p2021_p10, %p2020_p1 }
 0xa9b   : > { %p2023_p2 = pnand %p2022_p0, %p2016_p4 }
 0xa9d   : > { %2026 = shalt.err (!%p2023_p2)
}
 0xa9e   : > { %1731 = dma.vmem_to_hbm [thread:$0]  (%p2673_p11), %s2552_s15, 128, %s2550_s20, %s1387_s30  }
 0xa9f PF: > { %s2674_s29 = sld [smem:[#allocation24_spill]]  ;;  %s2675_s19 = sld [smem:[#allocation21_spill]] }
 0xaa0   : > { %s2676_s26 = sld [smem:[#allocation27_spill]] }
 0xaa5   : > { %p1763_p3 = scmp.ge.s32.totalorder %s2674_s29, 2  ;;  %s1413_s24 = sand.u32 1, %s2675_s19  }
 0xaa6   : > { %p2677_p5 = scmp.ne.s32.totalorder %s2676_s26, 0  ;;  %s1414_s2 = scalar_lea.sflag [#allocation9], %s1413_s24 }
 0xaa8   : > { %p1750_p6 = pnand %p1763_p3, %p2677_p5 }
 0xaaa   : > { %2068 = dma.done.wait (!%p1750_p6), %s1414_s2, 128  }
 0xaab   : > { %2070 = vsyncadd (!%p1750_p6), %s1414_s2, 4294967168  ;;  %s34_s19 = sadd.s32 1, %s2674_s29   ;;  %s2678_s0 = sld [smem:[#allocation22_spill]] }
 0xaac   : > { %p31_p7 = scmp.ge.s32.totalorder %s34_s19, 4   ;;  %s2679_s29 = sld [smem:[#allocation28_spill]] }
 0xaad   : > { %s2680_s30 = sld [smem:[#allocation23_spill]]  ;;  %s2681_s25 = sld [smem:[#allocation25_spill]] }
 0xaae   : > { %s2682_s27 = smov %s2077_s28  ;;  %33 = sbr.rel (!%p31_p7) target bundleno = 17 (0x11), region = 183 }
 0xab1   : > { %s2683_s28 = smov %s2678_s0 }
 0xab3   : > { %s2684_s0 = smov %s2681_s25 }
 0xab5   :  { %1419 = vsyncpa [#allocation8], 1 }
 0xab6   :  { %1421 = vsyncpa [#allocation8 + $0x1], 1 }
 0xab7   :  { %1422 = vsyncpa [#allocation11], 1 }
 0xab8   :  { %1423 = vsyncpa [#allocation14], 1 }
 0xab9   :  { %1424 = vsyncpa [#allocation9], 1 }
 0xaba   :  { %1426 = vsyncpa [#allocation9 + $0x1], 1 }

</bundles_post_ra>
